<compile_context>
chip_gen: v5e
topology: v5e:2x2
jax: 0.10.0
libtpu: 0.0.40
codegen_flags: <defaults>
</compile_context>

<pallas_src>
import functools

import jax
import jax.numpy as jnp
from jax import lax
from jax.experimental import pallas as pl
from jax.experimental.pallas import tpu as pltpu


# ----------------------------------------------------------------------------
# Pallas kernel: fused matmul + bias + activation (the hot path of every layer)
# ----------------------------------------------------------------------------
def _matmul_bias_act_kernel(x_ref, w_ref, b_ref, o_ref, *, activation):
    acc = jnp.dot(x_ref[...], w_ref[...], preferred_element_type=jnp.float32)
    acc = acc + b_ref[...]
    if activation == "relu":
        acc = jnp.maximum(acc, 0.0)
    elif activation == "sigmoid":
        # tanh form of the logistic: runs on the EUP slot, exactly bounded [0,1].
        acc = 0.5 * jnp.tanh(0.5 * acc) + 0.5
    o_ref[...] = acc.astype(o_ref.dtype)


def _pick_tile_m(m):
    """Largest row tile (multiple of 16) that divides M; else the full M."""
    for cand in (1024, 512, 256, 128, 64, 32, 16):
        if m % cand == 0:
            return cand
    return m


def matmul_bias_act(x, w, b, activation="none", *, out_dtype=jnp.float32,
                    compute_dtype=jnp.bfloat16):
    """(M, K) @ (K, N) + b with fused activation, tiled & pipelined over M."""
    M, K = x.shape
    N = w.shape[1]
    x = x.astype(compute_dtype)
    w = w.astype(compute_dtype)
    b2 = b.reshape(1, N).astype(jnp.float32)

    tm = _pick_tile_m(M)
    grid = (M // tm,)
    kernel = functools.partial(_matmul_bias_act_kernel, activation=activation)

    bytes_accessed = int(
        M * K * x.dtype.itemsize + K * N * w.dtype.itemsize
        + N * 4 + M * N * jnp.dtype(out_dtype).itemsize)
    cost = pl.CostEstimate(
        flops=2 * M * K * N,
        transcendentals=M * N if activation == "sigmoid" else 0,
        bytes_accessed=bytes_accessed)

    return pl.pallas_call(
        kernel,
        out_shape=jax.ShapeDtypeStruct((M, N), out_dtype),
        grid=grid,
        in_specs=[
            pl.BlockSpec((tm, K), lambda i: (i, 0)),   # activations: tiled over M
            pl.BlockSpec((K, N), lambda i: (0, 0)),    # weights: resident
            pl.BlockSpec((1, N), lambda i: (0, 0)),    # bias: resident
        ],
        out_specs=pl.BlockSpec((tm, N), lambda i: (i, 0)),
        compiler_params=pltpu.CompilerParams(
            dimension_semantics=("parallel",)),
        cost_estimate=cost,
    )(x, w, b2)


# ----------------------------------------------------------------------------
# ConvTranspose2d(k=3, s=2, p=1, op=1) via sub-pixel decomposition
# ----------------------------------------------------------------------------
def conv_transpose_layer(x_nhwc, w_big, b_big, activation, *,
                         out_dtype=jnp.bfloat16, out_layout="nhwc"):
    """x_nhwc: (B, H, W, Cin); w_big: (4*Cin, 4*Cout) sub-pixel matmul weight."""
    B, H, W, Cin = x_nhwc.shape
    Cout = w_big.shape[1] // 4

    # The 4 output phases only read these 4 shifted neighbours of the
    # (un-dilated) input -> no zero FLOPs, no 9x im2col duplication.
    xp = jnp.pad(x_nhwc, ((0, 0), (0, 1), (0, 1), (0, 0)))
    x_cat = jnp.concatenate(
        [xp[:, :H, :W, :], xp[:, :H, 1:, :], xp[:, 1:, :W, :], xp[:, 1:, 1:, :]],
        axis=-1).reshape(B * H * W, 4 * Cin)

    y = matmul_bias_act(x_cat, w_big, b_big, activation, out_dtype=out_dtype)
    y = y.reshape(B, H, W, 2, 2, Cout)                      # (b, i, j, dy, dx, c)
    if out_layout == "nhwc":
        return y.transpose(0, 1, 3, 2, 4, 5).reshape(B, 2 * H, 2 * W, Cout)
    # "nchw": fold the phase interleave and the final NCHW transpose into one.
    return y.transpose(0, 5, 1, 3, 2, 4).reshape(B, Cout, 2 * H, 2 * W)


# ----------------------------------------------------------------------------
# Parameters: torch-layout init + one-time conversion to kernel layouts
# ----------------------------------------------------------------------------
def init_decoder_params(key, output_size, num_concepts, feature_sizes=(16, 32, 64, 128)):
    """Parameters in the original torch layouts / init distributions."""
    fs = tuple(feature_sizes[::-1])                         # e.g. (128, 64, 32, 16)
    start_size = output_size[1] // (2 ** len(fs))
    params = {"feature_sizes": fs, "start_size": start_size}

    def uniform(k, shape, fan_in):
        bound = 1.0 / jnp.sqrt(jnp.float32(fan_in))
        return jax.random.uniform(k, shape, jnp.float32, -bound, bound)

    keys = jax.random.split(key, 2 + 2 * len(fs))
    ki = iter(range(len(keys)))

    # fc: Linear(num_concepts -> fs[0]*S*S); torch weight layout (out, in)
    fc_out = fs[0] * start_size * start_size
    params["fc_w"] = uniform(keys[next(ki)], (fc_out, num_concepts), num_concepts)
    params["fc_b"] = uniform(keys[next(ki)], (fc_out,), num_concepts)

    # ConvTranspose2d weights, torch layout (Cin, Cout, 3, 3).
    # PyTorch's default init for this layout uses fan_in = out_channels * kh * kw.
    convs = []
    in_ch = fs[0]
    for out_ch in fs[1:]:
        w = uniform(keys[next(ki)], (in_ch, out_ch, 3, 3), out_ch * 9)
        bb = uniform(keys[next(ki)], (out_ch,), out_ch * 9)
        convs.append((w, bb))
        in_ch = out_ch
    params["convs"] = convs

    out_ch = output_size[0]
    w = uniform(keys[next(ki)], (in_ch, out_ch, 3, 3), out_ch * 9)
    bb = uniform(keys[next(ki)], (out_ch,), out_ch * 9)
    params["final"] = (w, bb)
    return params


def _subpixel_weights(w_t, b):
    """torch (Cin, Cout, 3, 3) -> ((4*Cin, 4*Cout), (4*Cout,)) matmul layout."""
    cin, cout = w_t.shape[0], w_t.shape[1]
    wf = jnp.transpose(w_t[:, :, ::-1, ::-1], (2, 3, 0, 1))   # (ky, kx, Cin, Cout)
    z = jnp.zeros((cin, cout), jnp.float32)
    # Row blocks: x[i,j], x[i,j+1], x[i+1,j], x[i+1,j+1]
    # Col blocks: output phases (dy,dx) = (0,0), (0,1), (1,0), (1,1)
    w_big = jnp.block([
        [wf[1, 1], wf[1, 0], wf[0, 1], wf[0, 0]],
        [z,        wf[1, 2], z,        wf[0, 2]],
        [z,        z,        wf[2, 1], wf[2, 0]],
        [z,        z,        z,        wf[2, 2]],
    ])
    b_big = jnp.tile(b, 4)
    return w_big, b_big


def prep_decoder_params(raw):
    """One-time conversion of torch-layout params into kernel matmul layouts."""
    fs, s = raw["feature_sizes"], raw["start_size"]
    f0 = fs[0]
    nc = raw["fc_w"].shape[1]
    # Permute fc columns so the fc output is directly (B, S, S, F0) (NHWC);
    # this removes the per-forward NCHW->NHWC transpose.
    fc_w = (raw["fc_w"].T.reshape(nc, f0, s, s)
            .transpose(0, 2, 3, 1).reshape(nc, s * s * f0))
    fc_b = raw["fc_b"].reshape(f0, s, s).transpose(1, 2, 0).reshape(-1)
    return {
        "feature_sizes": fs, "start_size": s,
        "fc_w": fc_w, "fc_b": fc_b,
        "convs": [_subpixel_weights(w, b) for (w, b) in raw["convs"]],
        "final": _subpixel_weights(*raw["final"]),
    }


# ----------------------------------------------------------------------------
# Forward pass (matches the torch module's semantics)
# ----------------------------------------------------------------------------
def decoder_forward(concepts, params):
    fs = params["feature_sizes"]
    s = params["start_size"]
    bsz = concepts.shape[0]

    # fc (Pallas matmul); tiny K=M, keep f32 here.  Output is NHWC-ordered.
    x = matmul_bias_act(concepts, params["fc_w"], params["fc_b"], "none",
                        out_dtype=jnp.bfloat16, compute_dtype=jnp.float32)
    x = x.reshape(bsz, s, s, fs[0])

    for (w_big, b_big) in params["convs"]:
        x = conv_transpose_layer(x, w_big, b_big, "relu",
                                 out_dtype=jnp.bfloat16, out_layout="nhwc")

    w_big, b_big = params["final"]
    # Final layer: f32 sigmoid output, emitted directly in NCHW.
    return conv_transpose_layer(x, w_big, b_big, "sigmoid",
                                out_dtype=jnp.float32, out_layout="nchw")


# ----------------------------------------------------------------------------
# Pure-JAX f32 reference (torch-layout params) for the correctness check
# ----------------------------------------------------------------------------
def _ref_conv_transpose(x_nchw, w_t, b):
    w_fwd = jnp.transpose(w_t[:, :, ::-1, ::-1], (1, 0, 2, 3))   # (Cout, Cin, 3, 3)
    y = lax.conv_general_dilated(
        x_nchw, w_fwd, window_strides=(1, 1), padding=((1, 2), (1, 2)),
        lhs_dilation=(2, 2), dimension_numbers=("NCHW", "OIHW", "NCHW"))
    return y + b.reshape(1, -1, 1, 1)


def decoder_reference(concepts, raw):
    fs, s = raw["feature_sizes"], raw["start_size"]
    bsz = concepts.shape[0]
    x = concepts @ raw["fc_w"].T + raw["fc_b"]
    x = x.reshape(bsz, fs[0], s, s)
    for (w, b) in raw["convs"]:
        x = jax.nn.relu(_ref_conv_transpose(x, w, b))
    w, b = raw["final"]
    return jax.nn.sigmoid(_ref_conv_transpose(x, w, b))


# ----------------------------------------------------------------------------
if __name__ == "__main__":
    # Small shapes consistent with the module:
    #   output_size = (3, 32, 32), 4 upsampling stages -> start_size = 32 / 16 = 2
    output_size = (3, 32, 32)
    num_concepts = 8
    feature_sizes = (4, 8, 16, 32)   # reversed inside -> (32, 16, 8, 4)
    batch = 2

    key = jax.random.PRNGKey(0)
    pkey, xkey = jax.random.split(key)
    raw_params = init_decoder_params(pkey, output_size, num_concepts, feature_sizes)
    params = prep_decoder_params(raw_params)
    concepts = jax.random.normal(xkey, (batch, num_concepts), jnp.float32)

    fwd = jax.jit(functools.partial(decoder_forward, params=params))
    out = jax.block_until_ready(fwd(concepts))

    expected_shape = (batch,) + tuple(output_size)
    assert out.shape == expected_shape, (out.shape, expected_shape)
    assert bool(jnp.all(jnp.isfinite(out)))
    assert bool(jnp.all((out >= 0.0) & (out <= 1.0)))     # sigmoid output range

    # Cross-check against a pure-JAX f32 reference of the torch module
    # (loose tolerance: matmul inputs are bf16 in the Pallas path).
    ref = decoder_reference(concepts, raw_params)
    max_err = float(jnp.max(jnp.abs(out - ref)))
    assert max_err < 5e-2, f"max abs err vs reference: {max_err}"

    print("KERNEL_OK")
</pallas_src>

<mosaic_0001>
module attributes {stable_mosaic.version = 11 : i64} {
  func.func @_matmul_bias_act_kernel(%arg0: i32, %arg1: memref<2x8xf32, #tpu.memory_space<vmem>>, %arg2: memref<8x128xf32, #tpu.memory_space<vmem>>, %arg3: memref<1x128xf32, #tpu.memory_space<vmem>>, %arg4: memref<2x128xbf16, #tpu.memory_space<vmem>>) attributes {dimension_semantics = [#tpu.dimension_semantics<parallel>], iteration_bounds = array<i64: 1>, scalar_prefetch = 0 : i64, scratch_operands = 0 : i64, tpu.core_type = #tpu.core_type<tc>, window_params = [{transform_indices = @transform_0, window_bounds = array<i64: 2, 8>}, {pipeline_mode = #tpu.pipeline_mode<synchronous>, transform_indices = @transform_1, window_bounds = array<i64: 8, 128>}, {pipeline_mode = #tpu.pipeline_mode<synchronous>, transform_indices = @transform_2, window_bounds = array<i64: 1, 128>}, {transform_indices = @transform_3, window_bounds = array<i64: 2, 128>}]} {
    %c0 = arith.constant 0 : index
    %c0_0 = arith.constant 0 : index
    %0 = vector.load %arg1[%c0, %c0_0] : memref<2x8xf32, #tpu.memory_space<vmem>>, vector<2x8xf32>
    %c0_1 = arith.constant 0 : index
    %c0_2 = arith.constant 0 : index
    %1 = vector.load %arg2[%c0_1, %c0_2] : memref<8x128xf32, #tpu.memory_space<vmem>>, vector<8x128xf32>
    %cst = arith.constant dense<0.000000e+00> : vector<2x128xf32>
    %2 = tpu.matmul %0, %1, %cst {dimension_numbers = #tpu.dot_dimension_numbers<[1], [0], [0], [1], [0, 0, 1, 1], [], []>} : vector<2x8xf32>, vector<8x128xf32>, vector<2x128xf32> -> vector<2x128xf32>
    %c0_3 = arith.constant 0 : index
    %c0_4 = arith.constant 0 : index
    %3 = vector.load %arg3[%c0_3, %c0_4] : memref<1x128xf32, #tpu.memory_space<vmem>>, vector<1x128xf32>
    %4 = vector.broadcast %3 : vector<1x128xf32> to vector<2x128xf32>
    %5 = arith.addf %2, %4 : vector<2x128xf32>
    %6 = arith.truncf %5 : vector<2x128xf32> to vector<2x128xbf16>
    %c0_5 = arith.constant 0 : index
    %c0_6 = arith.constant 0 : index
    %7 = vector.load %arg4[%c0_5, %c0_6] : memref<2x128xbf16, #tpu.memory_space<vmem>>, vector<2x128xbf16>
    tpu.vector_store %arg4[%c0_5, %c0_6], %6 {strides = array<i32>} : memref<2x128xbf16, #tpu.memory_space<vmem>>, vector<2x128xbf16>,
    return
  }
  func.func @transform_0(%arg0: i32) -> (i32, i32) {
    %c0_i32 = arith.constant 0 : i32
    %c0_i32_0 = arith.constant 0 : i32
    return %arg0, %c0_i32 : i32, i32
  }
  func.func @transform_1(%arg0: i32) -> (i32, i32) {
    %c0_i32 = arith.constant 0 : i32
    %c0_i32_0 = arith.constant 0 : i32
    %c0_i32_1 = arith.constant 0 : i32
    return %c0_i32, %c0_i32_0 : i32, i32
  }
  func.func @transform_2(%arg0: i32) -> (i32, i32) {
    %c0_i32 = arith.constant 0 : i32
    %c0_i32_0 = arith.constant 0 : i32
    %c0_i32_1 = arith.constant 0 : i32
    return %c0_i32, %c0_i32_0 : i32, i32
  }
  func.func @transform_3(%arg0: i32) -> (i32, i32) {
    %c0_i32 = arith.constant 0 : i32
    %c0_i32_0 = arith.constant 0 : i32
    return %arg0, %c0_i32 : i32, i32
  }
}

module attributes {stable_mosaic.version = 11 : i64} {
  func.func @_matmul_bias_act_kernel(%arg0: i32, %arg1: memref<8x128xbf16, #tpu.memory_space<vmem>>, %arg2: memref<128x64xbf16, #tpu.memory_space<vmem>>, %arg3: memref<1x64xf32, #tpu.memory_space<vmem>>, %arg4: memref<8x64xbf16, #tpu.memory_space<vmem>>) attributes {dimension_semantics = [#tpu.dimension_semantics<parallel>], iteration_bounds = array<i64: 1>, scalar_prefetch = 0 : i64, scratch_operands = 0 : i64, tpu.core_type = #tpu.core_type<tc>, window_params = [{transform_indices = @transform_0, window_bounds = array<i64: 8, 128>}, {pipeline_mode = #tpu.pipeline_mode<synchronous>, transform_indices = @transform_1, window_bounds = array<i64: 128, 64>}, {pipeline_mode = #tpu.pipeline_mode<synchronous>, transform_indices = @transform_2, window_bounds = array<i64: 1, 64>}, {transform_indices = @transform_3, window_bounds = array<i64: 8, 64>}]} {
    %c0 = arith.constant 0 : index
    %c0_0 = arith.constant 0 : index
    %0 = vector.load %arg1[%c0, %c0_0] : memref<8x128xbf16, #tpu.memory_space<vmem>>, vector<8x128xbf16>
    %c0_1 = arith.constant 0 : index
    %c0_2 = arith.constant 0 : index
    %1 = vector.load %arg2[%c0_1, %c0_2] : memref<128x64xbf16, #tpu.memory_space<vmem>>, vector<128x64xbf16>
    %cst = arith.constant dense<0.000000e+00> : vector<8x64xf32>
    %2 = tpu.matmul %0, %1, %cst {dimension_numbers = #tpu.dot_dimension_numbers<[1], [0], [0], [1], [0, 0, 1, 1], [], []>} : vector<8x128xbf16>, vector<128x64xbf16>, vector<8x64xf32> -> vector<8x64xf32>
    %c0_3 = arith.constant 0 : index
    %c0_4 = arith.constant 0 : index
    %3 = vector.load %arg3[%c0_3, %c0_4] : memref<1x64xf32, #tpu.memory_space<vmem>>, vector<1x64xf32>
    %4 = vector.broadcast %3 : vector<1x64xf32> to vector<8x64xf32>
    %5 = arith.addf %2, %4 : vector<8x64xf32>
    %cst_5 = arith.constant 0.000000e+00 : f32
    %6 = vector.broadcast %cst_5 : f32 to vector<8x64xf32>
    %7 = arith.maximumf %5, %6 : vector<8x64xf32>
    %8 = arith.truncf %7 : vector<8x64xf32> to vector<8x64xbf16>
    %c0_6 = arith.constant 0 : index
    %c0_7 = arith.constant 0 : index
    %9 = vector.load %arg4[%c0_6, %c0_7] : memref<8x64xbf16, #tpu.memory_space<vmem>>, vector<8x64xbf16>
    tpu.vector_store %arg4[%c0_6, %c0_7], %8 {strides = array<i32>} : memref<8x64xbf16, #tpu.memory_space<vmem>>, vector<8x64xbf16>,
    return
  }
  func.func @transform_0(%arg0: i32) -> (i32, i32) {
    %c0_i32 = arith.constant 0 : i32
    %c0_i32_0 = arith.constant 0 : i32
    return %arg0, %c0_i32 : i32, i32
  }
  func.func @transform_1(%arg0: i32) -> (i32, i32) {
    %c0_i32 = arith.constant 0 : i32
    %c0_i32_0 = arith.constant 0 : i32
    %c0_i32_1 = arith.constant 0 : i32
    return %c0_i32, %c0_i32_0 : i32, i32
  }
  func.func @transform_2(%arg0: i32) -> (i32, i32) {
    %c0_i32 = arith.constant 0 : i32
    %c0_i32_0 = arith.constant 0 : i32
    %c0_i32_1 = arith.constant 0 : i32
    return %c0_i32, %c0_i32_0 : i32, i32
  }
  func.func @transform_3(%arg0: i32) -> (i32, i32) {
    %c0_i32 = arith.constant 0 : i32
    %c0_i32_0 = arith.constant 0 : i32
    return %arg0, %c0_i32 : i32, i32
  }
}

module attributes {stable_mosaic.version = 11 : i64} {
  func.func @_matmul_bias_act_kernel(%arg0: i32, %arg1: memref<32x64xbf16, #tpu.memory_space<vmem>>, %arg2: memref<64x32xbf16, #tpu.memory_space<vmem>>, %arg3: memref<1x32xf32, #tpu.memory_space<vmem>>, %arg4: memref<32x32xbf16, #tpu.memory_space<vmem>>) attributes {dimension_semantics = [#tpu.dimension_semantics<parallel>], iteration_bounds = array<i64: 1>, scalar_prefetch = 0 : i64, scratch_operands = 0 : i64, tpu.core_type = #tpu.core_type<tc>, window_params = [{transform_indices = @transform_0, window_bounds = array<i64: 32, 64>}, {pipeline_mode = #tpu.pipeline_mode<synchronous>, transform_indices = @transform_1, window_bounds = array<i64: 64, 32>}, {pipeline_mode = #tpu.pipeline_mode<synchronous>, transform_indices = @transform_2, window_bounds = array<i64: 1, 32>}, {transform_indices = @transform_3, window_bounds = array<i64: 32, 32>}]} {
    %c0 = arith.constant 0 : index
    %c0_0 = arith.constant 0 : index
    %0 = vector.load %arg1[%c0, %c0_0] : memref<32x64xbf16, #tpu.memory_space<vmem>>, vector<32x64xbf16>
    %c0_1 = arith.constant 0 : index
    %c0_2 = arith.constant 0 : index
    %1 = vector.load %arg2[%c0_1, %c0_2] : memref<64x32xbf16, #tpu.memory_space<vmem>>, vector<64x32xbf16>
    %cst = arith.constant dense<0.000000e+00> : vector<32x32xf32>
    %2 = tpu.matmul %0, %1, %cst {dimension_numbers = #tpu.dot_dimension_numbers<[1], [0], [0], [1], [0, 0, 1, 1], [], []>} : vector<32x64xbf16>, vector<64x32xbf16>, vector<32x32xf32> -> vector<32x32xf32>
    %c0_3 = arith.constant 0 : index
    %c0_4 = arith.constant 0 : index
    %3 = vector.load %arg3[%c0_3, %c0_4] : memref<1x32xf32, #tpu.memory_space<vmem>>, vector<1x32xf32>
    %4 = vector.broadcast %3 : vector<1x32xf32> to vector<32x32xf32>
    %5 = arith.addf %2, %4 : vector<32x32xf32>
    %cst_5 = arith.constant 0.000000e+00 : f32
    %6 = vector.broadcast %cst_5 : f32 to vector<32x32xf32>
    %7 = arith.maximumf %5, %6 : vector<32x32xf32>
    %8 = arith.truncf %7 : vector<32x32xf32> to vector<32x32xbf16>
    %c0_6 = arith.constant 0 : index
    %c0_7 = arith.constant 0 : index
    %9 = vector.load %arg4[%c0_6, %c0_7] : memref<32x32xbf16, #tpu.memory_space<vmem>>, vector<32x32xbf16>
    tpu.vector_store %arg4[%c0_6, %c0_7], %8 {strides = array<i32>} : memref<32x32xbf16, #tpu.memory_space<vmem>>, vector<32x32xbf16>,
    return
  }
  func.func @transform_0(%arg0: i32) -> (i32, i32) {
    %c0_i32 = arith.constant 0 : i32
    %c0_i32_0 = arith.constant 0 : i32
    return %arg0, %c0_i32 : i32, i32
  }
  func.func @transform_1(%arg0: i32) -> (i32, i32) {
    %c0_i32 = arith.constant 0 : i32
    %c0_i32_0 = arith.constant 0 : i32
    %c0_i32_1 = arith.constant 0 : i32
    return %c0_i32, %c0_i32_0 : i32, i32
  }
  func.func @transform_2(%arg0: i32) -> (i32, i32) {
    %c0_i32 = arith.constant 0 : i32
    %c0_i32_0 = arith.constant 0 : i32
    %c0_i32_1 = arith.constant 0 : i32
    return %c0_i32, %c0_i32_0 : i32, i32
  }
  func.func @transform_3(%arg0: i32) -> (i32, i32) {
    %c0_i32 = arith.constant 0 : i32
    %c0_i32_0 = arith.constant 0 : i32
    return %arg0, %c0_i32 : i32, i32
  }
}

module attributes {stable_mosaic.version = 11 : i64} {
  func.func @_matmul_bias_act_kernel(%arg0: i32, %arg1: memref<128x32xbf16, #tpu.memory_space<vmem>>, %arg2: memref<32x16xbf16, #tpu.memory_space<vmem>>, %arg3: memref<1x16xf32, #tpu.memory_space<vmem>>, %arg4: memref<128x16xbf16, #tpu.memory_space<vmem>>) attributes {dimension_semantics = [#tpu.dimension_semantics<parallel>], iteration_bounds = array<i64: 1>, scalar_prefetch = 0 : i64, scratch_operands = 0 : i64, tpu.core_type = #tpu.core_type<tc>, window_params = [{transform_indices = @transform_0, window_bounds = array<i64: 128, 32>}, {pipeline_mode = #tpu.pipeline_mode<synchronous>, transform_indices = @transform_1, window_bounds = array<i64: 32, 16>}, {pipeline_mode = #tpu.pipeline_mode<synchronous>, transform_indices = @transform_2, window_bounds = array<i64: 1, 16>}, {transform_indices = @transform_3, window_bounds = array<i64: 128, 16>}]} {
    %c0 = arith.constant 0 : index
    %c0_0 = arith.constant 0 : index
    %0 = vector.load %arg1[%c0, %c0_0] : memref<128x32xbf16, #tpu.memory_space<vmem>>, vector<128x32xbf16>
    %c0_1 = arith.constant 0 : index
    %c0_2 = arith.constant 0 : index
    %1 = vector.load %arg2[%c0_1, %c0_2] : memref<32x16xbf16, #tpu.memory_space<vmem>>, vector<32x16xbf16>
    %cst = arith.constant dense<0.000000e+00> : vector<128x16xf32>
    %2 = tpu.matmul %0, %1, %cst {dimension_numbers = #tpu.dot_dimension_numbers<[1], [0], [0], [1], [0, 0, 1, 1], [], []>} : vector<128x32xbf16>, vector<32x16xbf16>, vector<128x16xf32> -> vector<128x16xf32>
    %c0_3 = arith.constant 0 : index
    %c0_4 = arith.constant 0 : index
    %3 = vector.load %arg3[%c0_3, %c0_4] : memref<1x16xf32, #tpu.memory_space<vmem>>, vector<1x16xf32>
    %4 = vector.broadcast %3 : vector<1x16xf32> to vector<128x16xf32>
    %5 = arith.addf %2, %4 : vector<128x16xf32>
    %cst_5 = arith.constant 0.000000e+00 : f32
    %6 = vector.broadcast %cst_5 : f32 to vector<128x16xf32>
    %7 = arith.maximumf %5, %6 : vector<128x16xf32>
    %8 = arith.truncf %7 : vector<128x16xf32> to vector<128x16xbf16>
    %c0_6 = arith.constant 0 : index
    %c0_7 = arith.constant 0 : index
    %9 = vector.load %arg4[%c0_6, %c0_7] : memref<128x16xbf16, #tpu.memory_space<vmem>>, vector<128x16xbf16>
    tpu.vector_store %arg4[%c0_6, %c0_7], %8 {strides = array<i32>} : memref<128x16xbf16, #tpu.memory_space<vmem>>, vector<128x16xbf16>,
    return
  }
  func.func @transform_0(%arg0: i32) -> (i32, i32) {
    %c0_i32 = arith.constant 0 : i32
    %c0_i32_0 = arith.constant 0 : i32
    return %arg0, %c0_i32 : i32, i32
  }
  func.func @transform_1(%arg0: i32) -> (i32, i32) {
    %c0_i32 = arith.constant 0 : i32
    %c0_i32_0 = arith.constant 0 : i32
    %c0_i32_1 = arith.constant 0 : i32
    return %c0_i32, %c0_i32_0 : i32, i32
  }
  func.func @transform_2(%arg0: i32) -> (i32, i32) {
    %c0_i32 = arith.constant 0 : i32
    %c0_i32_0 = arith.constant 0 : i32
    %c0_i32_1 = arith.constant 0 : i32
    return %c0_i32, %c0_i32_0 : i32, i32
  }
  func.func @transform_3(%arg0: i32) -> (i32, i32) {
    %c0_i32 = arith.constant 0 : i32
    %c0_i32_0 = arith.constant 0 : i32
    return %arg0, %c0_i32 : i32, i32
  }
}

module attributes {stable_mosaic.version = 11 : i64} {
  func.func @_matmul_bias_act_kernel(%arg0: i32, %arg1: memref<512x16xbf16, #tpu.memory_space<vmem>>, %arg2: memref<16x12xbf16, #tpu.memory_space<vmem>>, %arg3: memref<1x12xf32, #tpu.memory_space<vmem>>, %arg4: memref<512x12xf32, #tpu.memory_space<vmem>>) attributes {dimension_semantics = [#tpu.dimension_semantics<parallel>], iteration_bounds = array<i64: 1>, scalar_prefetch = 0 : i64, scratch_operands = 0 : i64, tpu.core_type = #tpu.core_type<tc>, window_params = [{transform_indices = @transform_0, window_bounds = array<i64: 512, 16>}, {pipeline_mode = #tpu.pipeline_mode<synchronous>, transform_indices = @transform_1, window_bounds = array<i64: 16, 12>}, {pipeline_mode = #tpu.pipeline_mode<synchronous>, transform_indices = @transform_2, window_bounds = array<i64: 1, 12>}, {transform_indices = @transform_3, window_bounds = array<i64: 512, 12>}]} {
    %c0 = arith.constant 0 : index
    %c0_0 = arith.constant 0 : index
    %0 = vector.load %arg1[%c0, %c0_0] : memref<512x16xbf16, #tpu.memory_space<vmem>>, vector<512x16xbf16>
    %c0_1 = arith.constant 0 : index
    %c0_2 = arith.constant 0 : index
    %1 = vector.load %arg2[%c0_1, %c0_2] : memref<16x12xbf16, #tpu.memory_space<vmem>>, vector<16x12xbf16>
    %cst = arith.constant dense<0.000000e+00> : vector<512x12xf32>
    %2 = tpu.matmul %0, %1, %cst {dimension_numbers = #tpu.dot_dimension_numbers<[1], [0], [0], [1], [0, 0, 1, 1], [], []>} : vector<512x16xbf16>, vector<16x12xbf16>, vector<512x12xf32> -> vector<512x12xf32>
    %c0_3 = arith.constant 0 : index
    %c0_4 = arith.constant 0 : index
    %3 = vector.load %arg3[%c0_3, %c0_4] : memref<1x12xf32, #tpu.memory_space<vmem>>, vector<1x12xf32>
    %4 = vector.broadcast %3 : vector<1x12xf32> to vector<512x12xf32>
    %5 = arith.addf %2, %4 : vector<512x12xf32>
    %cst_5 = arith.constant 5.000000e-01 : f32
    %6 = vector.broadcast %cst_5 : f32 to vector<512x12xf32>
    %7 = arith.mulf %6, %5 : vector<512x12xf32>
    %8 = math.tanh %7 : vector<512x12xf32>
    %cst_6 = arith.constant 5.000000e-01 : f32
    %9 = vector.broadcast %cst_6 : f32 to vector<512x12xf32>
    %10 = arith.mulf %9, %8 : vector<512x12xf32>
    %cst_7 = arith.constant 5.000000e-01 : f32
    %11 = vector.broadcast %cst_7 : f32 to vector<512x12xf32>
    %12 = arith.addf %10, %11 : vector<512x12xf32>
    %c0_8 = arith.constant 0 : index
    %c0_9 = arith.constant 0 : index
    %13 = vector.load %arg4[%c0_8, %c0_9] : memref<512x12xf32, #tpu.memory_space<vmem>>, vector<512x12xf32>
    tpu.vector_store %arg4[%c0_8, %c0_9], %12 {strides = array<i32>} : memref<512x12xf32, #tpu.memory_space<vmem>>, vector<512x12xf32>,
    return
  }
  func.func @transform_0(%arg0: i32) -> (i32, i32) {
    %c0_i32 = arith.constant 0 : i32
    %c0_i32_0 = arith.constant 0 : i32
    return %arg0, %c0_i32 : i32, i32
  }
  func.func @transform_1(%arg0: i32) -> (i32, i32) {
    %c0_i32 = arith.constant 0 : i32
    %c0_i32_0 = arith.constant 0 : i32
    %c0_i32_1 = arith.constant 0 : i32
    return %c0_i32, %c0_i32_0 : i32, i32
  }
  func.func @transform_2(%arg0: i32) -> (i32, i32) {
    %c0_i32 = arith.constant 0 : i32
    %c0_i32_0 = arith.constant 0 : i32
    %c0_i32_1 = arith.constant 0 : i32
    return %c0_i32, %c0_i32_0 : i32, i32
  }
  func.func @transform_3(%arg0: i32) -> (i32, i32) {
    %c0_i32 = arith.constant 0 : i32
    %c0_i32_0 = arith.constant 0 : i32
    return %arg0, %c0_i32 : i32, i32
  }
}

</mosaic_0001>

<bundles_post_ra>
// kernel: decoder_forward.5
= control target key start
LH: loop header
LB: loop body
LE: loop exit
PB: predicated region body
PF: predicated region fallthrough
CT: control target
= control target key end

     0   :  { %8 = vsyncpa [#allocation3], 0  ;;  %s209_s0 = inlined_call_operand.hbm [shape: f32[2,8], index: 0, kind: input, shape index: {}]   ;;  %s210_s1 = inlined_call_operand.hbm [shape: f32[8,128], index: 1, kind: input, shape index: {}]   ;;  %s211_s2 = inlined_call_operand.hbm [shape: f32[1,128], index: 2, kind: input, shape index: {}]   ;;  %s212_s3 = inlined_call_operand.vmem [shape: bf16[2,128], index: 3, kind: output, shape index: {}]  }
   0x1   :  { %9 = vsyncpa [#allocation5], 0  ;;  %s26_s14 = sshll.u32 %s210_s1, 4  ;;  %s174_s15 = smov [#allocation4]   ;;  %s27_s14 = int_to_ptr.hbm [resolvable:$true] %s26_s14 }
   0x2   :  { %s28_s16 = sshll.u32 %s174_s15, 4  ;;  %s15_s19 = sshll.u32 %s209_s0, 4  ;;  %s29_s16 = int_to_ptr.vmem [resolvable:$true] %s28_s16  ;;  %s16_s19 = int_to_ptr.hbm [resolvable:$true] %s15_s19 }
   0x3   :  { %31 = dma.hbm_to_vmem [thread:$0]  %s27_s14, 128, %s29_s16, [#allocation5]  }
   0x4   :  { %s175_s20 = smov [#allocation2]   ;;  %s37_s24 = sshll.u32 %s211_s2, 4  ;;  %s38_s24 = int_to_ptr.hbm [resolvable:$true] %s37_s24 }
   0x5   :  { %s17_s21 = sshll.u32 %s175_s20, 4  ;;  %s176_s1 = smov [#allocation6]   ;;  %s18_s21 = int_to_ptr.vmem [resolvable:$true] %s17_s21 }
   0x6   :  { %20 = dma.hbm_to_vmem [thread:$0]  %s16_s19, 32, %s18_s21, [#allocation3]  }
   0x7   :  { %s39_s25 = sshll.u32 %s176_s1, 4  ;;  %s40_s25 = int_to_ptr.vmem [resolvable:$true] %s39_s25 }
   0x8   :  { %42 = dma.hbm_to_vmem [thread:$0]  %s38_s24, 16, %s40_s25, [#allocation5]  }
   0x9   :  { %170 = dma.done.wait [#allocation3], 32  }
   0xa   :  { %171 = vsyncadd [#allocation3], 4294967264 }
   0xb   :  { %172 = dma.done.wait [#allocation5], 144  }
   0xc   :  { %173 = vsyncadd [#allocation5], 4294967152  ;;  %vm61_vm0 = vcmask 64512   ;;  %v56_v0 = vld [vmem:[#allocation4] sm:$0xff]  ;;  %v55_v1 = vld [vmem:[#allocation2] sm:$0x3] }
   0xd   :  { %80 = vmatpush.msra.mxu0 %v56_v0  ;;  %v97_v2 = vld [vmem:[#allocation6] ss:$0 sm:$0xff] }
   0xe   :  { %93 = vmatmul.msk.f32.vlgmr.msra.gmra.mxu0 %vm61_vm0, %v55_v1 }
  0x8b   :  { %v82_v3 = vpop.f32.mrf.mxu0 }
  0x8c   :  { %v83_v4 = vadd.f32 %v97_v2, %v82_v3 }
  0x8e   :  { %v85_v5 = vpack.c.bf16 %v83_v4, %v83_v4 }
  0x90   :  { %86 = vst [vmem:[%s212_s3] sm:$0x1] %v85_v5 }
  0x91   :  { %91 = vsyncpa [#allocation3], 1 }
  0x92   :  { %92 = vsyncpa [#allocation5], 1 }

// kernel: decoder_forward.6
= control target key start
LH: loop header
LB: loop body
LE: loop exit
PB: predicated region body
PF: predicated region fallthrough
CT: control target
= control target key end

     0   :  { %8 = vsyncpa [#allocation3], 0  ;;  %s269_s0 = inlined_call_operand.vmem [shape: bf16[8,128], index: 0, kind: input, shape index: {}]   ;;  %s270_s1 = inlined_call_operand.hbm [shape: bf16[128,64], index: 1, kind: input, shape index: {}]   ;;  %s271_s2 = inlined_call_operand.hbm [shape: f32[1,64], index: 2, kind: input, shape index: {}]   ;;  %s272_s3 = inlined_call_operand.vmem [shape: bf16[8,64], index: 3, kind: output, shape index: {}]  }
   0x1   :  { %s16_s14 = sshll.u32 %s270_s1, 4  ;;  %s17_s14 = int_to_ptr.hbm [resolvable:$true] %s16_s14 }
   0x2   :  { %9 = vsyncpa [#allocation5], 0  ;;  %s233_s15 = smov [#allocation2]   ;;  %s30_s19 = sshll.u32 %s271_s2, 4  ;;  %s31_s19 = int_to_ptr.hbm [resolvable:$true] %s30_s19 }
   0x3   :  { %s18_s16 = sshll.u32 %s233_s15, 4  ;;  %s234_s20 = smov 64   ;;  %s19_s16 = int_to_ptr.vmem [resolvable:$true] %s18_s16 }
   0x4   :  { %s235_s21 = smov 4   ;;  %s236_s22 = smov [#allocation4]  }
   0x5   :  { %24 = dma.hbm_to_vmem [thread:$0]  %s17_s14, 1024, %s19_s16, [#allocation3], %s234_s20, %s234_s20, %s235_s21  }
   0x6   :  { %s32_s23 = sshll.u32 %s236_s22, 4  ;;  %s33_s23 = int_to_ptr.vmem [resolvable:$true] %s32_s23 }
   0x7   :  { %35 = dma.hbm_to_vmem [thread:$0]  %s31_s19, 16, %s33_s23, [#allocation5]  }
   0x8   :  { %229 = dma.done.wait [#allocation3], 1024  }
   0x9   :  { %230 = vsyncadd [#allocation3], 4294966272 }
   0xa   :  { %231 = dma.done.wait [#allocation5], 16  }
   0xb   :  { %232 = vsyncadd [#allocation5], 4294967280  ;;  %v175_v0 = vld [vmem:[#allocation2 + $0x38] sm:$0xff]  ;;  %v174_v1 = vld [vmem:[#allocation2 + $0x30] sm:$0xff]  ;;  %vm128_vm0 = vcmask 519168  }
   0xc   :  { %113 = vmatpush.bf16.msra.mxu0 %v175_v0  ;;  %v173_v2 = vld [vmem:[#allocation2 + $0x28] sm:$0xff]  ;;  %v172_v3 = vld [vmem:[#allocation2 + $0x20] sm:$0xff]  ;;  %v171_v4 = vld [vmem:[#allocation2 + $0x18] sm:$0xff] }
   0xd   :  { %v170_v5 = vld [vmem:[#allocation2 + $0x10] sm:$0xff]  ;;  %v169_v6 = vld [vmem:[#allocation2 + $0x8] sm:$0xff]  ;;  %v168_v7 = vld [vmem:[#allocation2] sm:$0xff] }
   0xe   :  { %v44_v8 = vld [vmem:[%s269_s0] sm:$0xf] }
   0xf   :  { %v180_v9 = vld [vmem:[#allocation4] ss:$0 sm:$0xff] }
  0x10   :  { %114 = vmatpush.bf16.msra.mxu0 %v174_v1 }
  0x14   :  { %115 = vmatpush.bf16.msra.mxu0 %v173_v2 }
  0x18   :  { %116 = vmatpush.bf16.msra.mxu0 %v172_v3 }
  0x1c   :  { %117 = vmatpush.bf16.msra.mxu0 %v171_v4 }
  0x20   :  { %118 = vmatpush.bf16.msra.mxu0 %v170_v5 }
  0x24   :  { %119 = vmatpush.bf16.msra.mxu0 %v169_v6 }
  0x28   :  { %120 = vmatpush.bf16.msra.mxu0 %v168_v7 }
  0x2b   :  { %121 = vmatmul.bf16.vlgmr.msra.gmra.mxu0 %v44_v8 }
  0xa8   :  { %v122_v10 = vpop.f32.mrf.mxu0 }
  0xa9   :  { %v123_v11 = vadd.f32 %v180_v9, %v122_v10 }
  0xab   :  { %v126_v12 = vmax.f32 %v123_v11, 0.0 }
  0xad   :  { %v127_v13 = vpack.c.bf16 %v126_v12, %v126_v12 }
  0xaf   :  { %129 = vst.msk [vmem:[%s272_s3] sm:$0xf] %vm128_vm0, %v127_v13 }
  0xb0   :  { %v124_v14 = vpop.f32.mrf.mxu0 }
  0xb1   :  { %134 = vsyncpa [#allocation3], 1 }
  0xb2   :  { %135 = vsyncpa [#allocation5], 1 }

// kernel: decoder_forward.7
= control target key start
LH: loop header
LB: loop body
LE: loop exit
PB: predicated region body
PF: predicated region fallthrough
CT: control target
= control target key end

     0   :  { %8 = vsyncpa [#allocation3], 0  ;;  %s281_s0 = inlined_call_operand.vmem [shape: bf16[32,64], index: 0, kind: input, shape index: {}]   ;;  %s282_s1 = inlined_call_operand.hbm [shape: bf16[64,32], index: 1, kind: input, shape index: {}]   ;;  %s283_s2 = inlined_call_operand.hbm [shape: f32[1,32], index: 2, kind: input, shape index: {}]   ;;  %s284_s3 = inlined_call_operand.vmem [shape: bf16[32,32], index: 3, kind: output, shape index: {}]  }
   0x1   :  { %s16_s14 = sshll.u32 %s282_s1, 4  ;;  %s17_s14 = int_to_ptr.hbm [resolvable:$true] %s16_s14 }
   0x2   :  { %9 = vsyncpa [#allocation5], 0  ;;  %s233_s15 = smov [#allocation2]   ;;  %s30_s19 = sshll.u32 %s283_s2, 4  ;;  %s31_s19 = int_to_ptr.hbm [resolvable:$true] %s30_s19 }
   0x3   :  { %s18_s16 = sshll.u32 %s233_s15, 4  ;;  %s234_s20 = smov 64   ;;  %s19_s16 = int_to_ptr.vmem [resolvable:$true] %s18_s16 }
   0x4   :  { %s235_s21 = smov 4   ;;  %s236_s22 = smov [#allocation4]  }
   0x5   :  { %24 = dma.hbm_to_vmem [thread:$0]  %s17_s14, 512, %s19_s16, [#allocation3], %s234_s20, %s234_s20, %s235_s21  }
   0x6   :  { %s32_s23 = sshll.u32 %s236_s22, 4  ;;  %s33_s23 = int_to_ptr.vmem [resolvable:$true] %s32_s23 }
   0x7   :  { %35 = dma.hbm_to_vmem [thread:$0]  %s31_s19, 16, %s33_s23, [#allocation5]  }
   0x8   :  { %229 = dma.done.wait [#allocation3], 512  }
   0x9   :  { %230 = vsyncadd [#allocation3], 4294966784 }
   0xa   :  { %231 = dma.done.wait [#allocation5], 16  }
   0xb   :  { %232 = vsyncadd [#allocation5], 4294967280  ;;  %v171_v0 = vld [vmem:[#allocation2 + $0x18] sm:$0xff]  ;;  %v170_v1 = vld [vmem:[#allocation2 + $0x10] sm:$0xff]  ;;  %vm95_vm0 = vcmask 523264   ;;  %vm129_vm1 = vcmask 257024  }
   0xc   :  { %106 = vmatpush.bf16.msra.mxu0 %v171_v0  ;;  %172 = vmatpush.bf16.msra.mxu1 %v171_v0  ;;  %v169_v2 = vld [vmem:[#allocation2 + $0x8] sm:$0xff]  ;;  %v168_v3 = vld [vmem:[#allocation2] sm:$0xff] }
   0xd   :  { %v166_v4 = vld [vmem:[%s281_s0] sm:$0xff]  ;;  %v167_v5 = vld [vmem:[%s281_s0 + $0x8] sm:$0xff] }
   0xe   :  { %v180_v6 = vld [vmem:[#allocation4] ss:$0 sm:$0xff] }
  0x10   :  { %107 = vmatpush.bf16.msra.mxu0 %v170_v1  ;;  %173 = vmatpush.bf16.msra.mxu1 %v170_v1 }
  0x14   :  { %108 = vmatpush.bf16.msra.mxu0 %v169_v2  ;;  %174 = vmatpush.bf16.msra.mxu1 %v169_v2 }
  0x18   :  { %109 = vmatpush.bf16.msra.mxu0 %v168_v3  ;;  %175 = vmatpush.bf16.msra.mxu1 %v168_v3 }
  0x1b   :  { %164 = vmatmul.msk.bf16.vlgmr.msra.gmra.mxu0 %vm95_vm0, %v166_v4  ;;  %165 = vmatmul.msk.bf16.vlgmr.msra.gmra.mxu1 %vm95_vm0, %v167_v5 }
  0x98   :  { %v111_v7 = vpop.f32.mrf.mxu0  ;;  %v116_v8 = vpop.f32.mrf.mxu1 }
  0x99   :  { %v112_v9 = vadd.f32 %v180_v6, %v111_v7  ;;  %v117_v10 = vadd.f32 %v180_v6, %v116_v8 }
  0x9b   :  { %v121_v11 = vmax.f32 %v112_v9, 0.0  ;;  %v123_v12 = vmax.f32 %v117_v10, 0.0 }
  0x9d   :  { %v125_v13 = vpack.c.bf16 %v121_v11, %v121_v11  ;;  %v127_v14 = vpack.c.bf16 %v123_v12, %v123_v12 }
  0x9f   :  { %130 = vst.msk [vmem:[%s284_s3] sm:$0xf] %vm129_vm1, %v125_v13 }
  0xa0   :  { %132 = vst.msk [vmem:[%s284_s3 + $0x8] sm:$0xf] %vm129_vm1, %v127_v14  ;;  %v113_v15 = vpop.f32.mrf.mxu0  ;;  %v118_v16 = vpop.f32.mrf.mxu1 }
  0xa1   :  { %v114_v17 = vadd.f32 %v180_v6, %v113_v15  ;;  %v119_v18 = vadd.f32 %v180_v6, %v118_v16 }
  0xa3   :  { %v122_v19 = vmax.f32 %v114_v17, 0.0  ;;  %v124_v20 = vmax.f32 %v119_v18, 0.0 }
  0xa5   :  { %v126_v21 = vpack.c.bf16 %v122_v19, %v122_v19  ;;  %v128_v22 = vpack.c.bf16 %v124_v20, %v124_v20 }
  0xa7   :  { %131 = vst.msk [vmem:[%s284_s3 + $0x4] sm:$0xf] %vm129_vm1, %v126_v21 }
  0xa8   :  { %133 = vst.msk [vmem:[%s284_s3 + $0xc] sm:$0xf] %vm129_vm1, %v128_v22 }
  0xa9   :  { %138 = vsyncpa [#allocation3], 1 }
  0xaa   :  { %139 = vsyncpa [#allocation5], 1 }

// kernel: decoder_forward.8
= control target key start
LH: loop header
LB: loop body
LE: loop exit
PB: predicated region body
PF: predicated region fallthrough
CT: control target
= control target key end

     0   :  { %8 = vsyncpa [#allocation3], 0  ;;  %s515_s0 = inlined_call_operand.vmem [shape: bf16[128,32], index: 0, kind: input, shape index: {}]   ;;  %s516_s1 = inlined_call_operand.hbm [shape: bf16[32,16], index: 1, kind: input, shape index: {}]   ;;  %s517_s2 = inlined_call_operand.hbm [shape: f32[1,16], index: 2, kind: input, shape index: {}]   ;;  %s518_s3 = inlined_call_operand.vmem [shape: bf16[128,16], index: 3, kind: output, shape index: {}]  }
   0x1   :  { %s16_s14 = sshll.u32 %s516_s1, 4  ;;  %s17_s14 = int_to_ptr.hbm [resolvable:$true] %s16_s14 }
   0x2   :  { %9 = vsyncpa [#allocation5], 0  ;;  %s371_s15 = smov [#allocation2]   ;;  %s30_s19 = sshll.u32 %s517_s2, 4  ;;  %s31_s19 = int_to_ptr.hbm [resolvable:$true] %s30_s19 }
   0x3   :  { %s18_s16 = sshll.u32 %s371_s15, 4  ;;  %s372_s20 = smov 64   ;;  %s19_s16 = int_to_ptr.vmem [resolvable:$true] %s18_s16 }
   0x4   :  { %s373_s21 = smov 4   ;;  %s374_s22 = smov [#allocation4]  }
   0x5   :  { %24 = dma.hbm_to_vmem [thread:$0]  %s17_s14, 256, %s19_s16, [#allocation3], %s372_s20, %s372_s20, %s373_s21  }
   0x6   :  { %s32_s23 = sshll.u32 %s374_s22, 4  ;;  %s33_s23 = int_to_ptr.vmem [resolvable:$true] %s32_s23 }
   0x7   :  { %35 = dma.hbm_to_vmem [thread:$0]  %s31_s19, 16, %s33_s23, [#allocation5]  }
   0x8   :  { %367 = dma.done.wait [#allocation3], 256  }
   0x9   :  { %368 = vsyncadd [#allocation3], 4294967040 }
   0xa   :  { %369 = dma.done.wait [#allocation5], 16  }
   0xb   :  { %370 = vsyncadd [#allocation5], 4294967280  ;;  %v307_v0 = vld [vmem:[#allocation2 + $0x8] sm:$0xff]  ;;  %v306_v1 = vld [vmem:[#allocation2] sm:$0xff]  ;;  %vm121_vm0 = vcmask 261120   ;;  %vm227_vm1 = vcmask 125952  }
   0xc   :  { %152 = vmatpush.bf16.msra.mxu0 %v307_v0  ;;  %308 = vmatpush.bf16.msra.mxu1 %v307_v0  ;;  %v298_v2 = vld [vmem:[%s515_s0] sm:$0xff]  ;;  %v300_v3 = vld [vmem:[%s515_s0 + $0x10] sm:$0xff]  ;;  %v299_v6 = vld [vmem:[%s515_s0 + $0x8] sm:$0xff] }
   0xd   :  { %309 = vmatpush.bf16.msra.mxu2 %v307_v0  ;;  %310 = vmatpush.bf16.msra.mxu3 %v307_v0  ;;  %v302_v4 = vld [vmem:[%s515_s0 + $0x20] sm:$0xff]  ;;  %v304_v5 = vld [vmem:[%s515_s0 + $0x30] sm:$0xff]  ;;  %v301_v7 = vld [vmem:[%s515_s0 + $0x18] sm:$0xff] }
   0xe   :  { %v303_v8 = vld [vmem:[%s515_s0 + $0x28] sm:$0xff]  ;;  %v305_v9 = vld [vmem:[%s515_s0 + $0x38] sm:$0xff]  ;;  %v433_v10 = vld [vmem:[#allocation4] ss:$0 sm:$0xff] }
  0x10   :  { %153 = vmatpush.bf16.msra.mxu0 %v306_v1  ;;  %311 = vmatpush.bf16.msra.mxu1 %v306_v1 }
  0x11   :  { %312 = vmatpush.bf16.msra.mxu2 %v306_v1  ;;  %313 = vmatpush.bf16.msra.mxu3 %v306_v1 }
  0x13   :  { %290 = vmatmul.msk.bf16.vlgmr.msra.gmra.mxu0 %vm121_vm0, %v298_v2  ;;  %292 = vmatmul.msk.bf16.vlgmr.msra.gmra.mxu1 %vm121_vm0, %v300_v3 }
  0x14   :  { %294 = vmatmul.msk.bf16.vlgmr.msra.gmra.mxu2 %vm121_vm0, %v302_v4  ;;  %296 = vmatmul.msk.bf16.vlgmr.msra.gmra.mxu3 %vm121_vm0, %v304_v5 }
  0x23   :  { %291 = vmatmul.msk.bf16.gmra.mxu0 %vm121_vm0, %v299_v6  ;;  %293 = vmatmul.msk.bf16.gmra.mxu1 %vm121_vm0, %v301_v7 }
  0x24   :  { %295 = vmatmul.msk.bf16.gmra.mxu2 %vm121_vm0, %v303_v8  ;;  %297 = vmatmul.msk.bf16.gmra.mxu3 %vm121_vm0, %v305_v9 }
  0x90   :  { %v155_v11 = vpop.f32.mrf.mxu0  ;;  %v165_v12 = vpop.f32.mrf.mxu1 }
  0x91   :  { %v156_v13 = vadd.f32 %v433_v10, %v155_v11  ;;  %v166_v14 = vadd.f32 %v433_v10, %v165_v12 }
  0x93   :  { %v195_v15 = vmax.f32 %v156_v13, 0.0  ;;  %v199_v16 = vmax.f32 %v166_v14, 0.0 }
  0x95   :  { %v211_v17 = vpack.c.bf16 %v195_v15, %v195_v15  ;;  %v215_v18 = vpack.c.bf16 %v199_v16, %v199_v16 }
  0x97   :  { %228 = vst.msk [vmem:[%s518_s3] sm:$0xf] %vm227_vm1, %v211_v17  ;;  %v175_v19 = vpop.f32.mrf.mxu2  ;;  %v185_v20 = vpop.f32.mrf.mxu3 }
  0x98   :  { %232 = vst.msk [vmem:[%s518_s3 + $0x10] sm:$0xf] %vm227_vm1, %v215_v18  ;;  %v176_v21 = vadd.f32 %v433_v10, %v175_v19  ;;  %v186_v22 = vadd.f32 %v433_v10, %v185_v20  ;;  %v157_v23 = vpop.f32.mrf.mxu0  ;;  %v167_v24 = vpop.f32.mrf.mxu1 }
  0x99   :  { %v158_v25 = vadd.f32 %v433_v10, %v157_v23  ;;  %v168_v26 = vadd.f32 %v433_v10, %v167_v24 }
  0x9a   :  { %v203_v27 = vmax.f32 %v176_v21, 0.0  ;;  %v207_v28 = vmax.f32 %v186_v22, 0.0 }
  0x9b   :  { %v196_v29 = vmax.f32 %v158_v25, 0.0  ;;  %v200_v30 = vmax.f32 %v168_v26, 0.0 }
  0x9c   :  { %v219_v31 = vpack.c.bf16 %v203_v27, %v203_v27  ;;  %v223_v32 = vpack.c.bf16 %v207_v28, %v207_v28 }
  0x9d   :  { %v212_v33 = vpack.c.bf16 %v196_v29, %v196_v29  ;;  %v216_v34 = vpack.c.bf16 %v200_v30, %v200_v30 }
  0x9e   :  { %236 = vst.msk [vmem:[%s518_s3 + $0x20] sm:$0xf] %vm227_vm1, %v219_v31 }
  0x9f   :  { %240 = vst.msk [vmem:[%s518_s3 + $0x30] sm:$0xf] %vm227_vm1, %v223_v32  ;;  %v177_v35 = vpop.f32.mrf.mxu2  ;;  %v187_v36 = vpop.f32.mrf.mxu3 }
  0xa0   :  { %229 = vst.msk [vmem:[%s518_s3 + $0x4] sm:$0xf] %vm227_vm1, %v212_v33  ;;  %v178_v37 = vadd.f32 %v433_v10, %v177_v35  ;;  %v188_v38 = vadd.f32 %v433_v10, %v187_v36  ;;  %v160_v39 = vpop.f32.mrf.mxu0  ;;  %v170_v40 = vpop.f32.mrf.mxu1 }
  0xa1   :  { %233 = vst.msk [vmem:[%s518_s3 + $0x14] sm:$0xf] %vm227_vm1, %v216_v34  ;;  %v161_v41 = vadd.f32 %v433_v10, %v160_v39  ;;  %v171_v42 = vadd.f32 %v433_v10, %v170_v40 }
  0xa2   :  { %v204_v43 = vmax.f32 %v178_v37, 0.0  ;;  %v208_v44 = vmax.f32 %v188_v38, 0.0 }
  0xa3   :  { %v197_v45 = vmax.f32 %v161_v41, 0.0  ;;  %v201_v46 = vmax.f32 %v171_v42, 0.0 }
  0xa4   :  { %v220_v47 = vpack.c.bf16 %v204_v43, %v204_v43  ;;  %v224_v48 = vpack.c.bf16 %v208_v44, %v208_v44 }
  0xa5   :  { %v213_v49 = vpack.c.bf16 %v197_v45, %v197_v45  ;;  %v217_v50 = vpack.c.bf16 %v201_v46, %v201_v46 }
  0xa6   :  { %237 = vst.msk [vmem:[%s518_s3 + $0x24] sm:$0xf] %vm227_vm1, %v220_v47 }
  0xa7   :  { %241 = vst.msk [vmem:[%s518_s3 + $0x34] sm:$0xf] %vm227_vm1, %v224_v48  ;;  %v180_v51 = vpop.f32.mrf.mxu2  ;;  %v190_v52 = vpop.f32.mrf.mxu3 }
  0xa8   :  { %230 = vst.msk [vmem:[%s518_s3 + $0x8] sm:$0xf] %vm227_vm1, %v213_v49  ;;  %v181_v53 = vadd.f32 %v433_v10, %v180_v51  ;;  %v191_v54 = vadd.f32 %v433_v10, %v190_v52  ;;  %v162_v55 = vpop.f32.mrf.mxu0  ;;  %v172_v56 = vpop.f32.mrf.mxu1 }
  0xa9   :  { %234 = vst.msk [vmem:[%s518_s3 + $0x18] sm:$0xf] %vm227_vm1, %v217_v50  ;;  %v163_v57 = vadd.f32 %v433_v10, %v162_v55  ;;  %v173_v58 = vadd.f32 %v433_v10, %v172_v56 }
  0xaa   :  { %v205_v59 = vmax.f32 %v181_v53, 0.0  ;;  %v209_v60 = vmax.f32 %v191_v54, 0.0 }
  0xab   :  { %v198_v61 = vmax.f32 %v163_v57, 0.0  ;;  %v202_v62 = vmax.f32 %v173_v58, 0.0 }
  0xac   :  { %v221_v63 = vpack.c.bf16 %v205_v59, %v205_v59  ;;  %v225_v0 = vpack.c.bf16 %v209_v60, %v209_v60 }
  0xad   :  { %v214_v1 = vpack.c.bf16 %v198_v61, %v198_v61  ;;  %v218_v2 = vpack.c.bf16 %v202_v62, %v202_v62 }
  0xae   :  { %238 = vst.msk [vmem:[%s518_s3 + $0x28] sm:$0xf] %vm227_vm1, %v221_v63 }
  0xaf   :  { %242 = vst.msk [vmem:[%s518_s3 + $0x38] sm:$0xf] %vm227_vm1, %v225_v0  ;;  %v182_v3 = vpop.f32.mrf.mxu2  ;;  %v192_v4 = vpop.f32.mrf.mxu3 }
  0xb0   :  { %231 = vst.msk [vmem:[%s518_s3 + $0xc] sm:$0xf] %vm227_vm1, %v214_v1  ;;  %v183_v5 = vadd.f32 %v433_v10, %v182_v3  ;;  %v193_v6 = vadd.f32 %v433_v10, %v192_v4 }
  0xb1   :  { %235 = vst.msk [vmem:[%s518_s3 + $0x1c] sm:$0xf] %vm227_vm1, %v218_v2 }
  0xb2   :  { %v206_v7 = vmax.f32 %v183_v5, 0.0  ;;  %v210_v8 = vmax.f32 %v193_v6, 0.0 }
  0xb4   :  { %v222_v9 = vpack.c.bf16 %v206_v7, %v206_v7  ;;  %v226_v11 = vpack.c.bf16 %v210_v8, %v210_v8 }
  0xb6   :  { %239 = vst.msk [vmem:[%s518_s3 + $0x2c] sm:$0xf] %vm227_vm1, %v222_v9 }
  0xb7   :  { %243 = vst.msk [vmem:[%s518_s3 + $0x3c] sm:$0xf] %vm227_vm1, %v226_v11 }
  0xb8   :  { %248 = vsyncpa [#allocation3], 1 }
  0xb9   :  { %249 = vsyncpa [#allocation5], 1 }

// kernel: decoder_forward.9
= control target key start
LH: loop header
LB: loop body
LE: loop exit
PB: predicated region body
PF: predicated region fallthrough
CT: control target
= control target key end

     0   :  { %vm251_vm0 = vcmask 130048   ;;  %vm773_vm1 = vcmask 97280   ;;  %s1647_s1 = inlined_call_operand.vmem [shape: bf16[16,12], index: 1, kind: input, shape index: {}]   ;;  %s1648_s0 = inlined_call_operand.vmem [shape: bf16[512,16], index: 0, kind: input, shape index: {}]   ;;  %s1649_s2 = inlined_call_operand.vmem [shape: f32[1,12], index: 2, kind: input, shape index: {}]   ;;  %s1650_s3 = inlined_call_operand.vmem [shape: f32[512,12], index: 3, kind: output, shape index: {}]  }
   0x1   :  { %v1038_v0 = vld [vmem:[%s1647_s1] sm:$0xff]  ;;  %v1007_v5 = vld [vmem:[%s1648_s0 + $0x8] sm:$0xff]  ;;  %v1008_v9 = vld [vmem:[%s1648_s0 + $0x10] sm:$0xff] }
   0x2   :  { %v1006_v1 = vld [vmem:[%s1648_s0] sm:$0xff]  ;;  %355 = vmatpush.bf16.msra.mxu0 %v1038_v0  ;;  %1039 = vmatpush.bf16.msra.mxu1 %v1038_v0  ;;  %v1015_v6 = vld [vmem:[%s1648_s0 + $0x48] sm:$0xff]  ;;  %v1016_v10 = vld [vmem:[%s1648_s0 + $0x50] sm:$0xff] }
   0x3   :  { %v1014_v2 = vld [vmem:[%s1648_s0 + $0x40] sm:$0xff]  ;;  %1040 = vmatpush.bf16.msra.mxu2 %v1038_v0  ;;  %1041 = vmatpush.bf16.msra.mxu3 %v1038_v0  ;;  %v1023_v7 = vld [vmem:[%s1648_s0 + $0x88] sm:$0xff]  ;;  %v1024_v11 = vld [vmem:[%s1648_s0 + $0x90] sm:$0xff] }
   0x4   :  { %v1022_v3 = vld [vmem:[%s1648_s0 + $0x80] sm:$0xff]  ;;  %v1031_v8 = vld [vmem:[%s1648_s0 + $0xc8] sm:$0xff]  ;;  %v1032_v12 = vld [vmem:[%s1648_s0 + $0xd0] sm:$0xff] }
   0x5   :  { %v1030_v4 = vld [vmem:[%s1648_s0 + $0xc0] sm:$0xff]  ;;  %974 = vmatmul.msk.bf16.vlgmr.msra.gmra.mxu0 %vm251_vm0, %v1006_v1  ;;  %982 = vmatmul.msk.bf16.vlgmr.msra.gmra.mxu1 %vm251_vm0, %v1014_v2  ;;  %v1009_v13 = vld [vmem:[%s1648_s0 + $0x18] sm:$0xff]  ;;  %v1011_v21 = vld [vmem:[%s1648_s0 + $0x28] sm:$0xff] }
   0x6   :  { %990 = vmatmul.msk.bf16.vlgmr.msra.gmra.mxu2 %vm251_vm0, %v1022_v3  ;;  %998 = vmatmul.msk.bf16.vlgmr.msra.gmra.mxu3 %vm251_vm0, %v1030_v4  ;;  %v1017_v14 = vld [vmem:[%s1648_s0 + $0x58] sm:$0xff]  ;;  %v1010_v17 = vld [vmem:[%s1648_s0 + $0x20] sm:$0xff]  ;;  %v1019_v22 = vld [vmem:[%s1648_s0 + $0x68] sm:$0xff] }
   0x7   :  { %v1025_v15 = vld [vmem:[%s1648_s0 + $0x98] sm:$0xff]  ;;  %v1018_v18 = vld [vmem:[%s1648_s0 + $0x60] sm:$0xff]  ;;  %v1027_v23 = vld [vmem:[%s1648_s0 + $0xa8] sm:$0xff] }
   0x8   :  { %v1033_v16 = vld [vmem:[%s1648_s0 + $0xd8] sm:$0xff]  ;;  %v1026_v19 = vld [vmem:[%s1648_s0 + $0xa0] sm:$0xff]  ;;  %v1035_v24 = vld [vmem:[%s1648_s0 + $0xe8] sm:$0xff] }
   0x9   :  { %v1034_v20 = vld [vmem:[%s1648_s0 + $0xe0] sm:$0xff]  ;;  %v1012_v25 = vld [vmem:[%s1648_s0 + $0x30] sm:$0xff]  ;;  %v1013_v29 = vld [vmem:[%s1648_s0 + $0x38] sm:$0xff] }
   0xa   :  { %v1020_v26 = vld [vmem:[%s1648_s0 + $0x70] sm:$0xff]  ;;  %v1021_v30 = vld [vmem:[%s1648_s0 + $0x78] sm:$0xff]  ;;  %v1325_v33 = vld [vmem:[%s1649_s2] ss:$0 sm:$0xff] }
   0xb   :  { %v1028_v27 = vld [vmem:[%s1648_s0 + $0xb0] sm:$0xff]  ;;  %v1029_v31 = vld [vmem:[%s1648_s0 + $0xb8] sm:$0xff] }
   0xc   :  { %v1036_v28 = vld [vmem:[%s1648_s0 + $0xf0] sm:$0xff]  ;;  %v1037_v32 = vld [vmem:[%s1648_s0 + $0xf8] sm:$0xff] }
  0x15   :  { %975 = vmatmul.msk.bf16.gmra.mxu0 %vm251_vm0, %v1007_v5  ;;  %983 = vmatmul.msk.bf16.gmra.mxu1 %vm251_vm0, %v1015_v6 }
  0x16   :  { %991 = vmatmul.msk.bf16.gmra.mxu2 %vm251_vm0, %v1023_v7  ;;  %999 = vmatmul.msk.bf16.gmra.mxu3 %vm251_vm0, %v1031_v8 }
  0x25   :  { %976 = vmatmul.msk.bf16.gmra.mxu0 %vm251_vm0, %v1008_v9  ;;  %984 = vmatmul.msk.bf16.gmra.mxu1 %vm251_vm0, %v1016_v10 }
  0x26   :  { %992 = vmatmul.msk.bf16.gmra.mxu2 %vm251_vm0, %v1024_v11  ;;  %1000 = vmatmul.msk.bf16.gmra.mxu3 %vm251_vm0, %v1032_v12 }
  0x35   :  { %977 = vmatmul.msk.bf16.gmra.mxu0 %vm251_vm0, %v1009_v13  ;;  %985 = vmatmul.msk.bf16.gmra.mxu1 %vm251_vm0, %v1017_v14 }
  0x36   :  { %993 = vmatmul.msk.bf16.gmra.mxu2 %vm251_vm0, %v1025_v15  ;;  %1001 = vmatmul.msk.bf16.gmra.mxu3 %vm251_vm0, %v1033_v16 }
  0x45   :  { %978 = vmatmul.msk.bf16.gmra.mxu0 %vm251_vm0, %v1010_v17  ;;  %986 = vmatmul.msk.bf16.gmra.mxu1 %vm251_vm0, %v1018_v18 }
  0x46   :  { %994 = vmatmul.msk.bf16.gmra.mxu2 %vm251_vm0, %v1026_v19  ;;  %1002 = vmatmul.msk.bf16.gmra.mxu3 %vm251_vm0, %v1034_v20 }
  0x55   :  { %979 = vmatmul.msk.bf16.gmra.mxu0 %vm251_vm0, %v1011_v21  ;;  %987 = vmatmul.msk.bf16.gmra.mxu1 %vm251_vm0, %v1019_v22 }
  0x56   :  { %995 = vmatmul.msk.bf16.gmra.mxu2 %vm251_vm0, %v1027_v23  ;;  %1003 = vmatmul.msk.bf16.gmra.mxu3 %vm251_vm0, %v1035_v24 }
  0x65   :  { %980 = vmatmul.msk.bf16.gmra.mxu0 %vm251_vm0, %v1012_v25  ;;  %988 = vmatmul.msk.bf16.gmra.mxu1 %vm251_vm0, %v1020_v26 }
  0x66   :  { %996 = vmatmul.msk.bf16.gmra.mxu2 %vm251_vm0, %v1028_v27  ;;  %1004 = vmatmul.msk.bf16.gmra.mxu3 %vm251_vm0, %v1036_v28 }
  0x75   :  { %981 = vmatmul.msk.bf16.gmra.mxu0 %vm251_vm0, %v1013_v29  ;;  %989 = vmatmul.msk.bf16.gmra.mxu1 %vm251_vm0, %v1021_v30 }
  0x76   :  { %997 = vmatmul.msk.bf16.gmra.mxu2 %vm251_vm0, %v1029_v31  ;;  %1005 = vmatmul.msk.bf16.gmra.mxu3 %vm251_vm0, %v1037_v32 }
  0x82   :  { %v357_v34 = vpop.f32.mrf.mxu0  ;;  %v397_v35 = vpop.f32.mrf.mxu1 }
  0x83   :  { %v358_v36 = vadd.f32 %v1325_v33, %v357_v34  ;;  %v398_v37 = vadd.f32 %v1325_v33, %v397_v35 }
  0x85   :  { %v517_v38 = vmul.f32 0.5, %v358_v36  ;;  %v533_v39 = vmul.f32 0.5, %v398_v37 }
  0x87   :  { %1043 = vtanh.f32 %v517_v38 }
  0x88   :  { %1045 = vtanh.f32 %v533_v39 }
  0x89   :  { %v437_v40 = vpop.f32.mrf.mxu2  ;;  %v477_v41 = vpop.f32.mrf.mxu3 }
  0x8a   :  { %v438_v42 = vadd.f32 %v1325_v33, %v437_v40  ;;  %v478_v43 = vadd.f32 %v1325_v33, %v477_v41  ;;  %v359_v44 = vpop.f32.mrf.mxu0  ;;  %v399_v45 = vpop.f32.mrf.mxu1 }
  0x8b   :  { %v360_v46 = vadd.f32 %v1325_v33, %v359_v44  ;;  %v400_v47 = vadd.f32 %v1325_v33, %v399_v45 }
  0x8c   :  { %v549_v48 = vmul.f32 0.5, %v438_v42  ;;  %v565_v49 = vmul.f32 0.5, %v478_v43 }
  0x8d   :  { %v1044_v50 = vpop.eup %1043  ;;  %v518_v51 = vmul.f32 0.5, %v360_v46  ;;  %v534_v52 = vmul.f32 0.5, %v400_v47 }
  0x8e   :  { %v1046_v53 = vpop.eup %1045  ;;  %v645_v54 = vmul.f32 0.5, %v1044_v50  ;;  %1047 = vtanh.f32 %v549_v48 }
  0x8f   :  { %v661_v55 = vmul.f32 0.5, %v1046_v53  ;;  %1049 = vtanh.f32 %v565_v49 }
  0x90   :  { %v709_v56 = vadd.f32 0.5, %v645_v54  ;;  %1051 = vtanh.f32 %v518_v51 }
  0x91   :  { %v725_v57 = vadd.f32 0.5, %v661_v55  ;;  %1053 = vtanh.f32 %v534_v52  ;;  %v439_v58 = vpop.f32.mrf.mxu2  ;;  %v479_v59 = vpop.f32.mrf.mxu3 }
  0x92   :  { %774 = vst.msk [vmem:[%s1650_s3] sm:$0xff] %vm773_vm1, %v709_v56  ;;  %v440_v60 = vadd.f32 %v1325_v33, %v439_v58  ;;  %v480_v61 = vadd.f32 %v1325_v33, %v479_v59  ;;  %v362_v62 = vpop.f32.mrf.mxu0  ;;  %v402_v63 = vpop.f32.mrf.mxu1 }
  0x93   :  { %790 = vst.msk [vmem:[%s1650_s3 + $0x80] sm:$0xff] %vm773_vm1, %v725_v57  ;;  %v363_v0 = vadd.f32 %v1325_v33, %v362_v62  ;;  %v403_v1 = vadd.f32 %v1325_v33, %v402_v63 }
  0x94   :  { %v1048_v2 = vpop.eup %1047  ;;  %v550_v3 = vmul.f32 0.5, %v440_v60  ;;  %v566_v4 = vmul.f32 0.5, %v480_v61 }
  0x95   :  { %v1050_v5 = vpop.eup %1049  ;;  %v677_v6 = vmul.f32 0.5, %v1048_v2  ;;  %v519_v7 = vmul.f32 0.5, %v363_v0  ;;  %v535_v8 = vmul.f32 0.5, %v403_v1 }
  0x96   :  { %v1052_v9 = vpop.eup %1051  ;;  %v693_v10 = vmul.f32 0.5, %v1050_v5  ;;  %1055 = vtanh.f32 %v550_v3 }
  0x97   :  { %v1054_v11 = vpop.eup %1053  ;;  %v741_v12 = vadd.f32 0.5, %v677_v6  ;;  %v646_v13 = vmul.f32 0.5, %v1052_v9  ;;  %1057 = vtanh.f32 %v566_v4 }
  0x98   :  { %v757_v14 = vadd.f32 0.5, %v693_v10  ;;  %v662_v15 = vmul.f32 0.5, %v1054_v11  ;;  %1059 = vtanh.f32 %v519_v7 }
  0x99   :  { %806 = vst.msk [vmem:[%s1650_s3 + $0x100] sm:$0xff] %vm773_vm1, %v741_v12  ;;  %v710_v16 = vadd.f32 0.5, %v646_v13  ;;  %1061 = vtanh.f32 %v535_v8  ;;  %v442_v17 = vpop.f32.mrf.mxu2  ;;  %v482_v18 = vpop.f32.mrf.mxu3 }
  0x9a   :  { %822 = vst.msk [vmem:[%s1650_s3 + $0x180] sm:$0xff] %vm773_vm1, %v757_v14  ;;  %v726_v19 = vadd.f32 0.5, %v662_v15  ;;  %v443_v20 = vadd.f32 %v1325_v33, %v442_v17  ;;  %v483_v21 = vadd.f32 %v1325_v33, %v482_v18  ;;  %v364_v22 = vpop.f32.mrf.mxu0  ;;  %v404_v23 = vpop.f32.mrf.mxu1 }
  0x9b   :  { %775 = vst.msk [vmem:[%s1650_s3 + $0x8] sm:$0xff] %vm773_vm1, %v710_v16  ;;  %v365_v24 = vadd.f32 %v1325_v33, %v364_v22  ;;  %v405_v25 = vadd.f32 %v1325_v33, %v404_v23 }
  0x9c   :  { %v1056_v26 = vpop.eup %1055  ;;  %791 = vst.msk [vmem:[%s1650_s3 + $0x88] sm:$0xff] %vm773_vm1, %v726_v19  ;;  %v551_v27 = vmul.f32 0.5, %v443_v20  ;;  %v567_v28 = vmul.f32 0.5, %v483_v21 }
  0x9d   :  { %v1058_v29 = vpop.eup %1057  ;;  %v678_v30 = vmul.f32 0.5, %v1056_v26  ;;  %v520_v31 = vmul.f32 0.5, %v365_v24  ;;  %v536_v32 = vmul.f32 0.5, %v405_v25 }
  0x9e   :  { %v1060_v34 = vpop.eup %1059  ;;  %v694_v35 = vmul.f32 0.5, %v1058_v29  ;;  %1063 = vtanh.f32 %v551_v27 }
  0x9f   :  { %v1062_v36 = vpop.eup %1061  ;;  %v742_v37 = vadd.f32 0.5, %v678_v30  ;;  %v647_v38 = vmul.f32 0.5, %v1060_v34  ;;  %1065 = vtanh.f32 %v567_v28 }
  0xa0   :  { %v758_v39 = vadd.f32 0.5, %v694_v35  ;;  %v663_v40 = vmul.f32 0.5, %v1062_v36  ;;  %1067 = vtanh.f32 %v520_v31 }
  0xa1   :  { %807 = vst.msk [vmem:[%s1650_s3 + $0x108] sm:$0xff] %vm773_vm1, %v742_v37  ;;  %v711_v41 = vadd.f32 0.5, %v647_v38  ;;  %1069 = vtanh.f32 %v536_v32  ;;  %v444_v42 = vpop.f32.mrf.mxu2  ;;  %v484_v43 = vpop.f32.mrf.mxu3 }
  0xa2   :  { %823 = vst.msk [vmem:[%s1650_s3 + $0x188] sm:$0xff] %vm773_vm1, %v758_v39  ;;  %v727_v44 = vadd.f32 0.5, %v663_v40  ;;  %v445_v45 = vadd.f32 %v1325_v33, %v444_v42  ;;  %v485_v46 = vadd.f32 %v1325_v33, %v484_v43  ;;  %v367_v47 = vpop.f32.mrf.mxu0  ;;  %v407_v48 = vpop.f32.mrf.mxu1 }
  0xa3   :  { %776 = vst.msk [vmem:[%s1650_s3 + $0x10] sm:$0xff] %vm773_vm1, %v711_v41  ;;  %v368_v49 = vadd.f32 %v1325_v33, %v367_v47  ;;  %v408_v50 = vadd.f32 %v1325_v33, %v407_v48 }
  0xa4   :  { %v1064_v51 = vpop.eup %1063  ;;  %792 = vst.msk [vmem:[%s1650_s3 + $0x90] sm:$0xff] %vm773_vm1, %v727_v44  ;;  %v552_v52 = vmul.f32 0.5, %v445_v45  ;;  %v568_v53 = vmul.f32 0.5, %v485_v46 }
  0xa5   :  { %v1066_v54 = vpop.eup %1065  ;;  %v679_v55 = vmul.f32 0.5, %v1064_v51  ;;  %v521_v56 = vmul.f32 0.5, %v368_v49  ;;  %v537_v57 = vmul.f32 0.5, %v408_v50 }
  0xa6   :  { %v1068_v58 = vpop.eup %1067  ;;  %v695_v59 = vmul.f32 0.5, %v1066_v54  ;;  %1071 = vtanh.f32 %v552_v52 }
  0xa7   :  { %v1070_v60 = vpop.eup %1069  ;;  %v743_v61 = vadd.f32 0.5, %v679_v55  ;;  %v648_v62 = vmul.f32 0.5, %v1068_v58  ;;  %1073 = vtanh.f32 %v568_v53 }
  0xa8   :  { %v759_v63 = vadd.f32 0.5, %v695_v59  ;;  %v664_v0 = vmul.f32 0.5, %v1070_v60  ;;  %1075 = vtanh.f32 %v521_v56 }
  0xa9   :  { %808 = vst.msk [vmem:[%s1650_s3 + $0x110] sm:$0xff] %vm773_vm1, %v743_v61  ;;  %v712_v1 = vadd.f32 0.5, %v648_v62  ;;  %1077 = vtanh.f32 %v537_v57  ;;  %v447_v2 = vpop.f32.mrf.mxu2  ;;  %v487_v3 = vpop.f32.mrf.mxu3 }
  0xaa   :  { %824 = vst.msk [vmem:[%s1650_s3 + $0x190] sm:$0xff] %vm773_vm1, %v759_v63  ;;  %v728_v4 = vadd.f32 0.5, %v664_v0  ;;  %v448_v5 = vadd.f32 %v1325_v33, %v447_v2  ;;  %v488_v6 = vadd.f32 %v1325_v33, %v487_v3  ;;  %v369_v7 = vpop.f32.mrf.mxu0  ;;  %v409_v8 = vpop.f32.mrf.mxu1 }
  0xab   :  { %777 = vst.msk [vmem:[%s1650_s3 + $0x18] sm:$0xff] %vm773_vm1, %v712_v1  ;;  %v370_v9 = vadd.f32 %v1325_v33, %v369_v7  ;;  %v410_v10 = vadd.f32 %v1325_v33, %v409_v8 }
  0xac   :  { %v1072_v11 = vpop.eup %1071  ;;  %793 = vst.msk [vmem:[%s1650_s3 + $0x98] sm:$0xff] %vm773_vm1, %v728_v4  ;;  %v553_v12 = vmul.f32 0.5, %v448_v5  ;;  %v569_v13 = vmul.f32 0.5, %v488_v6 }
  0xad   :  { %v1074_v14 = vpop.eup %1073  ;;  %v680_v15 = vmul.f32 0.5, %v1072_v11  ;;  %v522_v16 = vmul.f32 0.5, %v370_v9  ;;  %v538_v17 = vmul.f32 0.5, %v410_v10 }
  0xae   :  { %v1076_v18 = vpop.eup %1075  ;;  %v696_v19 = vmul.f32 0.5, %v1074_v14  ;;  %1079 = vtanh.f32 %v553_v12 }
  0xaf   :  { %v1078_v20 = vpop.eup %1077  ;;  %v744_v21 = vadd.f32 0.5, %v680_v15  ;;  %v649_v22 = vmul.f32 0.5, %v1076_v18  ;;  %1081 = vtanh.f32 %v569_v13 }
  0xb0   :  { %v760_v23 = vadd.f32 0.5, %v696_v19  ;;  %v665_v24 = vmul.f32 0.5, %v1078_v20  ;;  %1083 = vtanh.f32 %v522_v16 }
  0xb1   :  { %809 = vst.msk [vmem:[%s1650_s3 + $0x118] sm:$0xff] %vm773_vm1, %v744_v21  ;;  %v713_v25 = vadd.f32 0.5, %v649_v22  ;;  %1085 = vtanh.f32 %v538_v17  ;;  %v449_v26 = vpop.f32.mrf.mxu2  ;;  %v489_v27 = vpop.f32.mrf.mxu3 }
  0xb2   :  { %825 = vst.msk [vmem:[%s1650_s3 + $0x198] sm:$0xff] %vm773_vm1, %v760_v23  ;;  %v729_v28 = vadd.f32 0.5, %v665_v24  ;;  %v450_v29 = vadd.f32 %v1325_v33, %v449_v26  ;;  %v490_v30 = vadd.f32 %v1325_v33, %v489_v27  ;;  %v372_v31 = vpop.f32.mrf.mxu0  ;;  %v412_v32 = vpop.f32.mrf.mxu1 }
  0xb3   :  { %778 = vst.msk [vmem:[%s1650_s3 + $0x20] sm:$0xff] %vm773_vm1, %v713_v25  ;;  %v373_v34 = vadd.f32 %v1325_v33, %v372_v31  ;;  %v413_v35 = vadd.f32 %v1325_v33, %v412_v32 }
  0xb4   :  { %v1080_v36 = vpop.eup %1079  ;;  %794 = vst.msk [vmem:[%s1650_s3 + $0xa0] sm:$0xff] %vm773_vm1, %v729_v28  ;;  %v554_v37 = vmul.f32 0.5, %v450_v29  ;;  %v570_v38 = vmul.f32 0.5, %v490_v30 }
  0xb5   :  { %v1082_v39 = vpop.eup %1081  ;;  %v681_v40 = vmul.f32 0.5, %v1080_v36  ;;  %v523_v41 = vmul.f32 0.5, %v373_v34  ;;  %v539_v42 = vmul.f32 0.5, %v413_v35 }
  0xb6   :  { %v1084_v43 = vpop.eup %1083  ;;  %v697_v44 = vmul.f32 0.5, %v1082_v39  ;;  %1087 = vtanh.f32 %v554_v37 }
  0xb7   :  { %v1086_v45 = vpop.eup %1085  ;;  %v745_v46 = vadd.f32 0.5, %v681_v40  ;;  %v650_v47 = vmul.f32 0.5, %v1084_v43  ;;  %1089 = vtanh.f32 %v570_v38 }
  0xb8   :  { %v761_v48 = vadd.f32 0.5, %v697_v44  ;;  %v666_v49 = vmul.f32 0.5, %v1086_v45  ;;  %1091 = vtanh.f32 %v523_v41 }
  0xb9   :  { %810 = vst.msk [vmem:[%s1650_s3 + $0x120] sm:$0xff] %vm773_vm1, %v745_v46  ;;  %v714_v50 = vadd.f32 0.5, %v650_v47  ;;  %1093 = vtanh.f32 %v539_v42  ;;  %v452_v51 = vpop.f32.mrf.mxu2  ;;  %v492_v52 = vpop.f32.mrf.mxu3 }
  0xba   :  { %826 = vst.msk [vmem:[%s1650_s3 + $0x1a0] sm:$0xff] %vm773_vm1, %v761_v48  ;;  %v730_v53 = vadd.f32 0.5, %v666_v49  ;;  %v453_v54 = vadd.f32 %v1325_v33, %v452_v51  ;;  %v493_v55 = vadd.f32 %v1325_v33, %v492_v52  ;;  %v374_v56 = vpop.f32.mrf.mxu0  ;;  %v414_v57 = vpop.f32.mrf.mxu1 }
  0xbb   :  { %779 = vst.msk [vmem:[%s1650_s3 + $0x28] sm:$0xff] %vm773_vm1, %v714_v50  ;;  %v375_v58 = vadd.f32 %v1325_v33, %v374_v56  ;;  %v415_v59 = vadd.f32 %v1325_v33, %v414_v57 }
  0xbc   :  { %v1088_v60 = vpop.eup %1087  ;;  %795 = vst.msk [vmem:[%s1650_s3 + $0xa8] sm:$0xff] %vm773_vm1, %v730_v53  ;;  %v555_v61 = vmul.f32 0.5, %v453_v54  ;;  %v571_v62 = vmul.f32 0.5, %v493_v55 }
  0xbd   :  { %v1090_v63 = vpop.eup %1089  ;;  %v682_v0 = vmul.f32 0.5, %v1088_v60  ;;  %v524_v1 = vmul.f32 0.5, %v375_v58  ;;  %v540_v2 = vmul.f32 0.5, %v415_v59 }
  0xbe   :  { %v1092_v3 = vpop.eup %1091  ;;  %v698_v4 = vmul.f32 0.5, %v1090_v63  ;;  %1095 = vtanh.f32 %v555_v61 }
  0xbf   :  { %v1094_v5 = vpop.eup %1093  ;;  %v746_v6 = vadd.f32 0.5, %v682_v0  ;;  %v651_v7 = vmul.f32 0.5, %v1092_v3  ;;  %1097 = vtanh.f32 %v571_v62 }
  0xc0   :  { %v762_v8 = vadd.f32 0.5, %v698_v4  ;;  %v667_v9 = vmul.f32 0.5, %v1094_v5  ;;  %1099 = vtanh.f32 %v524_v1 }
  0xc1   :  { %811 = vst.msk [vmem:[%s1650_s3 + $0x128] sm:$0xff] %vm773_vm1, %v746_v6  ;;  %v715_v10 = vadd.f32 0.5, %v651_v7  ;;  %1101 = vtanh.f32 %v540_v2  ;;  %v454_v11 = vpop.f32.mrf.mxu2  ;;  %v494_v12 = vpop.f32.mrf.mxu3 }
  0xc2   :  { %827 = vst.msk [vmem:[%s1650_s3 + $0x1a8] sm:$0xff] %vm773_vm1, %v762_v8  ;;  %v731_v13 = vadd.f32 0.5, %v667_v9  ;;  %v455_v14 = vadd.f32 %v1325_v33, %v454_v11  ;;  %v495_v15 = vadd.f32 %v1325_v33, %v494_v12  ;;  %v377_v16 = vpop.f32.mrf.mxu0  ;;  %v417_v17 = vpop.f32.mrf.mxu1 }
  0xc3   :  { %780 = vst.msk [vmem:[%s1650_s3 + $0x30] sm:$0xff] %vm773_vm1, %v715_v10  ;;  %v378_v18 = vadd.f32 %v1325_v33, %v377_v16  ;;  %v418_v19 = vadd.f32 %v1325_v33, %v417_v17 }
  0xc4   :  { %v1096_v20 = vpop.eup %1095  ;;  %796 = vst.msk [vmem:[%s1650_s3 + $0xb0] sm:$0xff] %vm773_vm1, %v731_v13  ;;  %v556_v21 = vmul.f32 0.5, %v455_v14  ;;  %v572_v22 = vmul.f32 0.5, %v495_v15 }
  0xc5   :  { %v1098_v23 = vpop.eup %1097  ;;  %v683_v24 = vmul.f32 0.5, %v1096_v20  ;;  %v525_v25 = vmul.f32 0.5, %v378_v18  ;;  %v541_v26 = vmul.f32 0.5, %v418_v19 }
  0xc6   :  { %v1100_v27 = vpop.eup %1099  ;;  %v699_v28 = vmul.f32 0.5, %v1098_v23  ;;  %1103 = vtanh.f32 %v556_v21 }
  0xc7   :  { %v1102_v29 = vpop.eup %1101  ;;  %v747_v30 = vadd.f32 0.5, %v683_v24  ;;  %v652_v31 = vmul.f32 0.5, %v1100_v27  ;;  %1105 = vtanh.f32 %v572_v22 }
  0xc8   :  { %v763_v32 = vadd.f32 0.5, %v699_v28  ;;  %v668_v34 = vmul.f32 0.5, %v1102_v29  ;;  %1107 = vtanh.f32 %v525_v25 }
  0xc9   :  { %812 = vst.msk [vmem:[%s1650_s3 + $0x130] sm:$0xff] %vm773_vm1, %v747_v30  ;;  %v716_v35 = vadd.f32 0.5, %v652_v31  ;;  %1109 = vtanh.f32 %v541_v26  ;;  %v457_v36 = vpop.f32.mrf.mxu2  ;;  %v497_v37 = vpop.f32.mrf.mxu3 }
  0xca   :  { %828 = vst.msk [vmem:[%s1650_s3 + $0x1b0] sm:$0xff] %vm773_vm1, %v763_v32  ;;  %v732_v38 = vadd.f32 0.5, %v668_v34  ;;  %v458_v39 = vadd.f32 %v1325_v33, %v457_v36  ;;  %v498_v40 = vadd.f32 %v1325_v33, %v497_v37  ;;  %v379_v41 = vpop.f32.mrf.mxu0  ;;  %v419_v42 = vpop.f32.mrf.mxu1 }
  0xcb   :  { %781 = vst.msk [vmem:[%s1650_s3 + $0x38] sm:$0xff] %vm773_vm1, %v716_v35  ;;  %v380_v43 = vadd.f32 %v1325_v33, %v379_v41  ;;  %v420_v44 = vadd.f32 %v1325_v33, %v419_v42 }
  0xcc   :  { %v1104_v45 = vpop.eup %1103  ;;  %797 = vst.msk [vmem:[%s1650_s3 + $0xb8] sm:$0xff] %vm773_vm1, %v732_v38  ;;  %v557_v46 = vmul.f32 0.5, %v458_v39  ;;  %v573_v47 = vmul.f32 0.5, %v498_v40 }
  0xcd   :  { %v1106_v48 = vpop.eup %1105  ;;  %v684_v49 = vmul.f32 0.5, %v1104_v45  ;;  %v526_v50 = vmul.f32 0.5, %v380_v43  ;;  %v542_v51 = vmul.f32 0.5, %v420_v44 }
  0xce   :  { %v1108_v52 = vpop.eup %1107  ;;  %v700_v53 = vmul.f32 0.5, %v1106_v48  ;;  %1111 = vtanh.f32 %v557_v46 }
  0xcf   :  { %v1110_v54 = vpop.eup %1109  ;;  %v748_v55 = vadd.f32 0.5, %v684_v49  ;;  %v653_v56 = vmul.f32 0.5, %v1108_v52  ;;  %1113 = vtanh.f32 %v573_v47 }
  0xd0   :  { %v764_v57 = vadd.f32 0.5, %v700_v53  ;;  %v669_v58 = vmul.f32 0.5, %v1110_v54  ;;  %1115 = vtanh.f32 %v526_v50 }
  0xd1   :  { %813 = vst.msk [vmem:[%s1650_s3 + $0x138] sm:$0xff] %vm773_vm1, %v748_v55  ;;  %v717_v59 = vadd.f32 0.5, %v653_v56  ;;  %1117 = vtanh.f32 %v542_v51  ;;  %v459_v60 = vpop.f32.mrf.mxu2  ;;  %v499_v61 = vpop.f32.mrf.mxu3 }
  0xd2   :  { %829 = vst.msk [vmem:[%s1650_s3 + $0x1b8] sm:$0xff] %vm773_vm1, %v764_v57  ;;  %v733_v62 = vadd.f32 0.5, %v669_v58  ;;  %v460_v63 = vadd.f32 %v1325_v33, %v459_v60  ;;  %v500_v0 = vadd.f32 %v1325_v33, %v499_v61  ;;  %v382_v1 = vpop.f32.mrf.mxu0  ;;  %v422_v2 = vpop.f32.mrf.mxu1 }
  0xd3   :  { %782 = vst.msk [vmem:[%s1650_s3 + $0x40] sm:$0xff] %vm773_vm1, %v717_v59  ;;  %v383_v3 = vadd.f32 %v1325_v33, %v382_v1  ;;  %v423_v4 = vadd.f32 %v1325_v33, %v422_v2 }
  0xd4   :  { %v1112_v5 = vpop.eup %1111  ;;  %798 = vst.msk [vmem:[%s1650_s3 + $0xc0] sm:$0xff] %vm773_vm1, %v733_v62  ;;  %v558_v6 = vmul.f32 0.5, %v460_v63  ;;  %v574_v7 = vmul.f32 0.5, %v500_v0 }
  0xd5   :  { %v1114_v8 = vpop.eup %1113  ;;  %v685_v9 = vmul.f32 0.5, %v1112_v5  ;;  %v527_v10 = vmul.f32 0.5, %v383_v3  ;;  %v543_v11 = vmul.f32 0.5, %v423_v4 }
  0xd6   :  { %v1116_v12 = vpop.eup %1115  ;;  %v701_v13 = vmul.f32 0.5, %v1114_v8  ;;  %1119 = vtanh.f32 %v558_v6 }
  0xd7   :  { %v1118_v14 = vpop.eup %1117  ;;  %v749_v15 = vadd.f32 0.5, %v685_v9  ;;  %v654_v16 = vmul.f32 0.5, %v1116_v12  ;;  %1121 = vtanh.f32 %v574_v7 }
  0xd8   :  { %v765_v17 = vadd.f32 0.5, %v701_v13  ;;  %v670_v18 = vmul.f32 0.5, %v1118_v14  ;;  %1123 = vtanh.f32 %v527_v10 }
  0xd9   :  { %814 = vst.msk [vmem:[%s1650_s3 + $0x140] sm:$0xff] %vm773_vm1, %v749_v15  ;;  %v718_v19 = vadd.f32 0.5, %v654_v16  ;;  %1125 = vtanh.f32 %v543_v11  ;;  %v462_v20 = vpop.f32.mrf.mxu2  ;;  %v502_v21 = vpop.f32.mrf.mxu3 }
  0xda   :  { %830 = vst.msk [vmem:[%s1650_s3 + $0x1c0] sm:$0xff] %vm773_vm1, %v765_v17  ;;  %v734_v22 = vadd.f32 0.5, %v670_v18  ;;  %v463_v23 = vadd.f32 %v1325_v33, %v462_v20  ;;  %v503_v24 = vadd.f32 %v1325_v33, %v502_v21  ;;  %v384_v25 = vpop.f32.mrf.mxu0  ;;  %v424_v26 = vpop.f32.mrf.mxu1 }
  0xdb   :  { %783 = vst.msk [vmem:[%s1650_s3 + $0x48] sm:$0xff] %vm773_vm1, %v718_v19  ;;  %v385_v27 = vadd.f32 %v1325_v33, %v384_v25  ;;  %v425_v28 = vadd.f32 %v1325_v33, %v424_v26 }
  0xdc   :  { %v1120_v29 = vpop.eup %1119  ;;  %799 = vst.msk [vmem:[%s1650_s3 + $0xc8] sm:$0xff] %vm773_vm1, %v734_v22  ;;  %v559_v30 = vmul.f32 0.5, %v463_v23  ;;  %v575_v31 = vmul.f32 0.5, %v503_v24 }
  0xdd   :  { %v1122_v32 = vpop.eup %1121  ;;  %v686_v34 = vmul.f32 0.5, %v1120_v29  ;;  %v528_v35 = vmul.f32 0.5, %v385_v27  ;;  %v544_v36 = vmul.f32 0.5, %v425_v28 }
  0xde   :  { %v1124_v37 = vpop.eup %1123  ;;  %v702_v38 = vmul.f32 0.5, %v1122_v32  ;;  %1127 = vtanh.f32 %v559_v30 }
  0xdf   :  { %v1126_v39 = vpop.eup %1125  ;;  %v750_v40 = vadd.f32 0.5, %v686_v34  ;;  %v655_v41 = vmul.f32 0.5, %v1124_v37  ;;  %1129 = vtanh.f32 %v575_v31 }
  0xe0   :  { %v766_v42 = vadd.f32 0.5, %v702_v38  ;;  %v671_v43 = vmul.f32 0.5, %v1126_v39  ;;  %1131 = vtanh.f32 %v528_v35 }
  0xe1   :  { %815 = vst.msk [vmem:[%s1650_s3 + $0x148] sm:$0xff] %vm773_vm1, %v750_v40  ;;  %v719_v44 = vadd.f32 0.5, %v655_v41  ;;  %1133 = vtanh.f32 %v544_v36  ;;  %v464_v45 = vpop.f32.mrf.mxu2  ;;  %v504_v46 = vpop.f32.mrf.mxu3 }
  0xe2   :  { %831 = vst.msk [vmem:[%s1650_s3 + $0x1c8] sm:$0xff] %vm773_vm1, %v766_v42  ;;  %v735_v47 = vadd.f32 0.5, %v671_v43  ;;  %v465_v48 = vadd.f32 %v1325_v33, %v464_v45  ;;  %v505_v49 = vadd.f32 %v1325_v33, %v504_v46  ;;  %v387_v50 = vpop.f32.mrf.mxu0  ;;  %v427_v51 = vpop.f32.mrf.mxu1 }
  0xe3   :  { %784 = vst.msk [vmem:[%s1650_s3 + $0x50] sm:$0xff] %vm773_vm1, %v719_v44  ;;  %v388_v52 = vadd.f32 %v1325_v33, %v387_v50  ;;  %v428_v53 = vadd.f32 %v1325_v33, %v427_v51 }
  0xe4   :  { %v1128_v54 = vpop.eup %1127  ;;  %800 = vst.msk [vmem:[%s1650_s3 + $0xd0] sm:$0xff] %vm773_vm1, %v735_v47  ;;  %v560_v55 = vmul.f32 0.5, %v465_v48  ;;  %v576_v56 = vmul.f32 0.5, %v505_v49 }
  0xe5   :  { %v1130_v57 = vpop.eup %1129  ;;  %v687_v58 = vmul.f32 0.5, %v1128_v54  ;;  %v529_v59 = vmul.f32 0.5, %v388_v52  ;;  %v545_v60 = vmul.f32 0.5, %v428_v53 }
  0xe6   :  { %v1132_v61 = vpop.eup %1131  ;;  %v703_v62 = vmul.f32 0.5, %v1130_v57  ;;  %1135 = vtanh.f32 %v560_v55 }
  0xe7   :  { %v1134_v63 = vpop.eup %1133  ;;  %v751_v0 = vadd.f32 0.5, %v687_v58  ;;  %v656_v1 = vmul.f32 0.5, %v1132_v61  ;;  %1137 = vtanh.f32 %v576_v56 }
  0xe8   :  { %v767_v2 = vadd.f32 0.5, %v703_v62  ;;  %v672_v3 = vmul.f32 0.5, %v1134_v63  ;;  %1139 = vtanh.f32 %v529_v59 }
  0xe9   :  { %816 = vst.msk [vmem:[%s1650_s3 + $0x150] sm:$0xff] %vm773_vm1, %v751_v0  ;;  %v720_v4 = vadd.f32 0.5, %v656_v1  ;;  %1141 = vtanh.f32 %v545_v60  ;;  %v467_v5 = vpop.f32.mrf.mxu2  ;;  %v507_v6 = vpop.f32.mrf.mxu3 }
  0xea   :  { %832 = vst.msk [vmem:[%s1650_s3 + $0x1d0] sm:$0xff] %vm773_vm1, %v767_v2  ;;  %v736_v7 = vadd.f32 0.5, %v672_v3  ;;  %v468_v8 = vadd.f32 %v1325_v33, %v467_v5  ;;  %v508_v9 = vadd.f32 %v1325_v33, %v507_v6  ;;  %v389_v10 = vpop.f32.mrf.mxu0  ;;  %v429_v11 = vpop.f32.mrf.mxu1 }
  0xeb   :  { %785 = vst.msk [vmem:[%s1650_s3 + $0x58] sm:$0xff] %vm773_vm1, %v720_v4  ;;  %v390_v12 = vadd.f32 %v1325_v33, %v389_v10  ;;  %v430_v13 = vadd.f32 %v1325_v33, %v429_v11 }
  0xec   :  { %v1136_v14 = vpop.eup %1135  ;;  %801 = vst.msk [vmem:[%s1650_s3 + $0xd8] sm:$0xff] %vm773_vm1, %v736_v7  ;;  %v561_v15 = vmul.f32 0.5, %v468_v8  ;;  %v577_v16 = vmul.f32 0.5, %v508_v9 }
  0xed   :  { %v1138_v17 = vpop.eup %1137  ;;  %v688_v18 = vmul.f32 0.5, %v1136_v14  ;;  %v530_v19 = vmul.f32 0.5, %v390_v12  ;;  %v546_v20 = vmul.f32 0.5, %v430_v13 }
  0xee   :  { %v1140_v21 = vpop.eup %1139  ;;  %v704_v22 = vmul.f32 0.5, %v1138_v17  ;;  %1143 = vtanh.f32 %v561_v15 }
  0xef   :  { %v1142_v23 = vpop.eup %1141  ;;  %v752_v24 = vadd.f32 0.5, %v688_v18  ;;  %v657_v25 = vmul.f32 0.5, %v1140_v21  ;;  %1145 = vtanh.f32 %v577_v16 }
  0xf0   :  { %v768_v26 = vadd.f32 0.5, %v704_v22  ;;  %v673_v27 = vmul.f32 0.5, %v1142_v23  ;;  %1147 = vtanh.f32 %v530_v19 }
  0xf1   :  { %817 = vst.msk [vmem:[%s1650_s3 + $0x158] sm:$0xff] %vm773_vm1, %v752_v24  ;;  %v721_v28 = vadd.f32 0.5, %v657_v25  ;;  %1149 = vtanh.f32 %v546_v20  ;;  %v469_v29 = vpop.f32.mrf.mxu2  ;;  %v509_v30 = vpop.f32.mrf.mxu3 }
  0xf2   :  { %833 = vst.msk [vmem:[%s1650_s3 + $0x1d8] sm:$0xff] %vm773_vm1, %v768_v26  ;;  %v737_v31 = vadd.f32 0.5, %v673_v27  ;;  %v470_v32 = vadd.f32 %v1325_v33, %v469_v29  ;;  %v510_v34 = vadd.f32 %v1325_v33, %v509_v30  ;;  %v392_v35 = vpop.f32.mrf.mxu0  ;;  %v432_v36 = vpop.f32.mrf.mxu1 }
  0xf3   :  { %786 = vst.msk [vmem:[%s1650_s3 + $0x60] sm:$0xff] %vm773_vm1, %v721_v28  ;;  %v393_v37 = vadd.f32 %v1325_v33, %v392_v35  ;;  %v433_v38 = vadd.f32 %v1325_v33, %v432_v36 }
  0xf4   :  { %v1144_v39 = vpop.eup %1143  ;;  %802 = vst.msk [vmem:[%s1650_s3 + $0xe0] sm:$0xff] %vm773_vm1, %v737_v31  ;;  %v562_v40 = vmul.f32 0.5, %v470_v32  ;;  %v578_v41 = vmul.f32 0.5, %v510_v34 }
  0xf5   :  { %v1146_v42 = vpop.eup %1145  ;;  %v689_v43 = vmul.f32 0.5, %v1144_v39  ;;  %v531_v44 = vmul.f32 0.5, %v393_v37  ;;  %v547_v45 = vmul.f32 0.5, %v433_v38 }
  0xf6   :  { %v1148_v46 = vpop.eup %1147  ;;  %v705_v47 = vmul.f32 0.5, %v1146_v42  ;;  %1151 = vtanh.f32 %v562_v40 }
  0xf7   :  { %v1150_v48 = vpop.eup %1149  ;;  %v753_v49 = vadd.f32 0.5, %v689_v43  ;;  %v658_v50 = vmul.f32 0.5, %v1148_v46  ;;  %1153 = vtanh.f32 %v578_v41 }
  0xf8   :  { %v769_v51 = vadd.f32 0.5, %v705_v47  ;;  %v674_v52 = vmul.f32 0.5, %v1150_v48  ;;  %1155 = vtanh.f32 %v531_v44 }
  0xf9   :  { %818 = vst.msk [vmem:[%s1650_s3 + $0x160] sm:$0xff] %vm773_vm1, %v753_v49  ;;  %v722_v53 = vadd.f32 0.5, %v658_v50  ;;  %1157 = vtanh.f32 %v547_v45  ;;  %v472_v54 = vpop.f32.mrf.mxu2  ;;  %v512_v55 = vpop.f32.mrf.mxu3 }
  0xfa   :  { %834 = vst.msk [vmem:[%s1650_s3 + $0x1e0] sm:$0xff] %vm773_vm1, %v769_v51  ;;  %v738_v56 = vadd.f32 0.5, %v674_v52  ;;  %v473_v57 = vadd.f32 %v1325_v33, %v472_v54  ;;  %v513_v58 = vadd.f32 %v1325_v33, %v512_v55  ;;  %v394_v59 = vpop.f32.mrf.mxu0  ;;  %v434_v60 = vpop.f32.mrf.mxu1 }
  0xfb   :  { %787 = vst.msk [vmem:[%s1650_s3 + $0x68] sm:$0xff] %vm773_vm1, %v722_v53  ;;  %v395_v61 = vadd.f32 %v1325_v33, %v394_v59  ;;  %v435_v62 = vadd.f32 %v1325_v33, %v434_v60 }
  0xfc   :  { %v1152_v63 = vpop.eup %1151  ;;  %803 = vst.msk [vmem:[%s1650_s3 + $0xe8] sm:$0xff] %vm773_vm1, %v738_v56  ;;  %v563_v0 = vmul.f32 0.5, %v473_v57  ;;  %v579_v1 = vmul.f32 0.5, %v513_v58 }
  0xfd   :  { %v1154_v2 = vpop.eup %1153  ;;  %v690_v3 = vmul.f32 0.5, %v1152_v63  ;;  %v532_v4 = vmul.f32 0.5, %v395_v61  ;;  %v548_v5 = vmul.f32 0.5, %v435_v62 }
  0xfe   :  { %v1156_v6 = vpop.eup %1155  ;;  %v706_v7 = vmul.f32 0.5, %v1154_v2  ;;  %1159 = vtanh.f32 %v563_v0 }
  0xff   :  { %v1158_v8 = vpop.eup %1157  ;;  %v754_v9 = vadd.f32 0.5, %v690_v3  ;;  %v659_v10 = vmul.f32 0.5, %v1156_v6  ;;  %1161 = vtanh.f32 %v579_v1 }
 0x100   :  { %v770_v11 = vadd.f32 0.5, %v706_v7  ;;  %v675_v12 = vmul.f32 0.5, %v1158_v8  ;;  %1163 = vtanh.f32 %v532_v4 }
 0x101   :  { %819 = vst.msk [vmem:[%s1650_s3 + $0x168] sm:$0xff] %vm773_vm1, %v754_v9  ;;  %v723_v13 = vadd.f32 0.5, %v659_v10  ;;  %1165 = vtanh.f32 %v548_v5  ;;  %v474_v14 = vpop.f32.mrf.mxu2  ;;  %v514_v15 = vpop.f32.mrf.mxu3 }
 0x102   :  { %835 = vst.msk [vmem:[%s1650_s3 + $0x1e8] sm:$0xff] %vm773_vm1, %v770_v11  ;;  %v739_v16 = vadd.f32 0.5, %v675_v12  ;;  %v475_v17 = vadd.f32 %v1325_v33, %v474_v14  ;;  %v515_v18 = vadd.f32 %v1325_v33, %v514_v15 }
 0x103   :  { %788 = vst.msk [vmem:[%s1650_s3 + $0x70] sm:$0xff] %vm773_vm1, %v723_v13 }
 0x104   :  { %v1160_v19 = vpop.eup %1159  ;;  %804 = vst.msk [vmem:[%s1650_s3 + $0xf0] sm:$0xff] %vm773_vm1, %v739_v16  ;;  %v564_v20 = vmul.f32 0.5, %v475_v17  ;;  %v580_v21 = vmul.f32 0.5, %v515_v18 }
 0x105   :  { %v1162_v22 = vpop.eup %1161  ;;  %v691_v23 = vmul.f32 0.5, %v1160_v19 }
 0x106   :  { %v1164_v24 = vpop.eup %1163  ;;  %v707_v25 = vmul.f32 0.5, %v1162_v22  ;;  %1167 = vtanh.f32 %v564_v20 }
 0x107   :  { %v1166_v26 = vpop.eup %1165  ;;  %v755_v33 = vadd.f32 0.5, %v691_v23  ;;  %v660_v27 = vmul.f32 0.5, %v1164_v24  ;;  %1169 = vtanh.f32 %v580_v21 }
 0x108   :  { %v771_v28 = vadd.f32 0.5, %v707_v25  ;;  %v676_v29 = vmul.f32 0.5, %v1166_v26 }
 0x109   :  { %820 = vst.msk [vmem:[%s1650_s3 + $0x170] sm:$0xff] %vm773_vm1, %v755_v33  ;;  %v724_v30 = vadd.f32 0.5, %v660_v27 }
 0x10a   :  { %836 = vst.msk [vmem:[%s1650_s3 + $0x1f0] sm:$0xff] %vm773_vm1, %v771_v28  ;;  %v740_v31 = vadd.f32 0.5, %v676_v29 }
 0x10b   :  { %789 = vst.msk [vmem:[%s1650_s3 + $0x78] sm:$0xff] %vm773_vm1, %v724_v30 }
 0x10c   :  { %v1168_v32 = vpop.eup %1167  ;;  %805 = vst.msk [vmem:[%s1650_s3 + $0xf8] sm:$0xff] %vm773_vm1, %v740_v31 }
 0x10d   :  { %v1170_v34 = vpop.eup %1169  ;;  %v692_v35 = vmul.f32 0.5, %v1168_v32 }
 0x10e   :  { %v708_v36 = vmul.f32 0.5, %v1170_v34 }
 0x10f   :  { %v756_v37 = vadd.f32 0.5, %v692_v35 }
 0x110   :  { %v772_v38 = vadd.f32 0.5, %v708_v36 }
 0x111   :  { %821 = vst.msk [vmem:[%s1650_s3 + $0x178] sm:$0xff] %vm773_vm1, %v756_v37 }
 0x112   :  { %837 = vst.msk [vmem:[%s1650_s3 + $0x1f8] sm:$0xff] %vm773_vm1, %v772_v38 }

</bundles_post_ra>
